<compile_context>
chip_gen: v5e
topology: v5e:2x2
jax: 0.10.0
libtpu: 0.0.40
codegen_flags: <defaults>
</compile_context>

<pallas_src>
import functools

import jax
import jax.numpy as jnp
from jax.experimental import pallas as pl
from jax.experimental.pallas import tpu as pltpu


# VMEM budgeting: blocks are sized against ~8 MiB so double-buffered inputs +
# outputs stay far below v7x's 64 MiB/TC physical VMEM (32 MiB default scoped
# limit); v5e/v6e (128 MiB) have even more headroom.
_VMEM_LIMIT_BYTES = 32 * 1024 * 1024
_BLOCK_BUDGET_BYTES = 8 * 1024 * 1024
_TP_MAX = 1024  # pixel-tile width (lanes) for the matmul / BN stages


def _win(start, size, stride):
    """Shifted (optionally strided) window along one ref axis."""
    return pl.ds(start, size) if stride == 1 else pl.ds(start, size, stride)


def _pick_channel_tile(cin, bytes_per_channel):
    """Channel tile for stage 1: full Cin if it fits the budget, else the largest
    multiple-of-8 divisor of Cin that does (BlockSpec second-minor-dim rule)."""
    if cin <= 8 or cin * bytes_per_channel <= _BLOCK_BUDGET_BYTES:
        return cin
    t = max(8, min(cin, (_BLOCK_BUDGET_BYTES // max(bytes_per_channel, 1)) // 8 * 8))
    while t >= 8:
        if cin % t == 0:
            return int(t)
        t -= 8
    # TODO(synk): no multiple-of-8 divisor fits the budget; fall back to full Cin
    #   (output-row tiling with halo'd window DMA would be needed for extreme shapes).
    return cin


def _pick_pixel_tile(p):
    """Lane tile for the (C, pixels) stages: a multiple of 128 that divides P."""
    if p % 128 != 0:
        # TODO(synk): mask the ragged tail so the pixel axis can still be tiled when
        #   Ho*Wo is not a multiple of 128; for now use one (full-extent) tile.
        return p
    tp = min(p, _TP_MAX)
    while p % tp != 0:
        tp -= 128
    return tp


# --------------------------- stage 1 kernel ---------------------------
def _dw_stats_kernel(xp_ref, wd_ref, bd_ref, dw_ref, st_ref, *, kh, kw, sh, sw):
    """Depthwise conv for one (image, channel-block) + fused BN1 sum / sum-of-squares."""
    tc, ho, wo = dw_ref.shape
    f32 = jnp.float32

    wts = wd_ref[...].astype(f32)                   # (TC, KH*KW) -- loaded once, hoisted
    acc = jnp.zeros((tc, ho, wo), f32)              # f32 accumulator
    for i in range(kh):
        for j in range(kw):
            # Shifted window read straight from the input ref (no whole-array load,
            # no materialized strided slices).
            tap = xp_ref[:, _win(i, ho, sh), _win(j, wo, sw)].astype(f32)
            acc = acc + tap * wts[:, i * kw + j][:, None, None]
    acc = acc + bd_ref[...].astype(f32)[:, :, None]  # depthwise bias (TC,1)->(TC,1,1)

    dw_ref[...] = acc.astype(dw_ref.dtype)

    # Single-pass BN1 statistics for this tile (cross-tile reduction done outside).
    s = jnp.sum(jnp.sum(acc, axis=2), axis=1, keepdims=True)         # (TC, 1)
    ss = jnp.sum(jnp.sum(acc * acc, axis=2), axis=1, keepdims=True)  # (TC, 1)
    st_ref[...] = jnp.concatenate([s, ss], axis=1).astype(st_ref.dtype)


# --------------------------- stage 2 kernel ---------------------------
def _bn1_pw_stats_kernel(dw_ref, sc1_ref, sh1_ref, w1_ref, b1_ref, y_ref, st_ref):
    """Fused BN1 scale/shift + ReLU6 + 1x1 conv (MXU matmul) + BN2 partial stats."""
    f32 = jnp.float32
    h = dw_ref[...].astype(f32) * sc1_ref[...] + sh1_ref[...]   # (Cin, TP), lane-dense
    h = jnp.clip(h, 0.0, 6.0)                                   # ReLU6
    y = jnp.dot(w1_ref[...].astype(f32), h,                     # (Cout,Cin)@(Cin,TP)
                preferred_element_type=f32) + b1_ref[...]
    y_ref[...] = y.astype(y_ref.dtype)
    s = jnp.sum(y, axis=1, keepdims=True)                       # (Cout, 1)
    ss = jnp.sum(y * y, axis=1, keepdims=True)
    st_ref[...] = jnp.concatenate([s, ss], axis=1).astype(st_ref.dtype)


# --------------------------- stage 3 kernel ---------------------------
def _bn2_kernel(y_ref, sc2_ref, sh2_ref, o_ref):
    """Fused BN2 scale/shift + ReLU6 (lane-dense loads/stores)."""
    y = y_ref[...].astype(jnp.float32) * sc2_ref[...] + sh2_ref[...]
    o_ref[...] = jnp.clip(y, 0.0, 6.0).astype(o_ref.dtype)


def dsconv_forward(x_nchw, params, *, stride, padding, eps=1e-5):
    """Pallas implementation of DSConv.forward.  x_nchw: (N, Cin, H, W)."""
    wd, bd, w1, b1, g1, be1, g2, be2 = params
    n, cin, h, w = x_nchw.shape
    kh, kw = wd.shape[2], wd.shape[3]
    cout = w1.shape[0]
    sh = sw = stride
    ho = (h + 2 * padding - kh) // sh + 1
    wo = (w + 2 * padding - kw) // sw + 1
    hp, wp = h + 2 * padding, w + 2 * padding
    p = ho * wo
    f32 = jnp.float32

    # Spatial zero-pad only; the whole pipeline is NCHW-native (no layout transposes).
    xp = jnp.pad(x_nchw, ((0, 0), (0, 0), (padding, padding), (padding, padding)))

    # Depthwise weights (Cin,1,KH,KW) -> (Cin, KH*KW); tap index t = i*KW + j.
    wd_k = wd[:, 0, :, :].reshape(cin, kh * kw).astype(f32)
    bd_k = bd.reshape(cin, 1).astype(f32)
    w1_k = w1[:, :, 0, 0].astype(f32)               # (Cout, Cin)
    b1_k = b1.reshape(cout, 1).astype(f32)

    # ------------- stage 1: depthwise conv + BN1 partial stats -------------
    # Block = (one image) x (channel tile), double-buffered by the BlockSpec pipeline.
    bytes_per_chan = 4 * 2 * (hp * wp + 2 * ho * wo)
    tc = _pick_channel_tile(cin, bytes_per_chan)
    ncb = cin // tc

    dw, st1 = pl.pallas_call(
        functools.partial(_dw_stats_kernel, kh=kh, kw=kw, sh=sh, sw=sw),
        grid=(n, ncb),
        in_specs=[
            pl.BlockSpec((None, tc, hp, wp), lambda i, c: (i, c, 0, 0)),
            pl.BlockSpec((tc, kh * kw), lambda i, c: (c, 0)),
            pl.BlockSpec((tc, 1), lambda i, c: (c, 0)),
        ],
        out_specs=(
            pl.BlockSpec((None, tc, ho, wo), lambda i, c: (i, c, 0, 0)),
            pl.BlockSpec((None, tc, 2), lambda i, c: (i, c, 0)),
        ),
        out_shape=(
            jax.ShapeDtypeStruct((n, cin, ho, wo), f32),
            jax.ShapeDtypeStruct((n, cin, 2), f32),
        ),
        compiler_params=pltpu.CompilerParams(
            dimension_semantics=("parallel", "parallel"),
            vmem_limit_bytes=_VMEM_LIMIT_BYTES),
    )(xp, wd_k, bd_k)

    # Tiny O(Cin) reduction; fused BN1 scale/shift kept in f32.
    cnt = jnp.asarray(n * p, f32)
    mean1 = jnp.sum(st1[:, :, 0], axis=0) / cnt
    var1 = jnp.maximum(jnp.sum(st1[:, :, 1], axis=0) / cnt - mean1 * mean1, 0.0)
    scale1 = (g1.astype(f32) * jax.lax.rsqrt(var1 + eps)).reshape(cin, 1)
    shift1 = be1.astype(f32).reshape(cin, 1) - mean1.reshape(cin, 1) * scale1

    # -------- stage 2: BN1 apply + ReLU6 + 1x1 conv + BN2 partial stats --------
    # (C, pixels) layout: pixels on the 128-lane axis -> lane-dense compute & stores.
    tp = _pick_pixel_tile(p)
    npb = p // tp
    dw_flat = dw.reshape(n, cin, p)                  # free HBM reshape

    y, st2 = pl.pallas_call(
        _bn1_pw_stats_kernel,
        grid=(n, npb),
        in_specs=[
            pl.BlockSpec((None, cin, tp), lambda i, j: (i, 0, j)),
            pl.BlockSpec((cin, 1), lambda i, j: (0, 0)),
            pl.BlockSpec((cin, 1), lambda i, j: (0, 0)),
            pl.BlockSpec((cout, cin), lambda i, j: (0, 0)),
            pl.BlockSpec((cout, 1), lambda i, j: (0, 0)),
        ],
        out_specs=(
            pl.BlockSpec((None, cout, tp), lambda i, j: (i, 0, j)),
            pl.BlockSpec((None, None, cout, 2), lambda i, j: (i, j, 0, 0)),
        ),
        out_shape=(
            jax.ShapeDtypeStruct((n, cout, p), f32),
            jax.ShapeDtypeStruct((n, npb, cout, 2), f32),
        ),
        compiler_params=pltpu.CompilerParams(
            dimension_semantics=("parallel", "parallel"),
            vmem_limit_bytes=_VMEM_LIMIT_BYTES),
    )(dw_flat, scale1, shift1, w1_k, b1_k)

    mean2 = jnp.sum(st2[:, :, :, 0], axis=(0, 1)) / cnt
    var2 = jnp.maximum(jnp.sum(st2[:, :, :, 1], axis=(0, 1)) / cnt - mean2 * mean2, 0.0)
    scale2 = (g2.astype(f32) * jax.lax.rsqrt(var2 + eps)).reshape(cout, 1)
    shift2 = be2.astype(f32).reshape(cout, 1) - mean2.reshape(cout, 1) * scale2

    # ------------------- stage 3: BN2 apply + ReLU6 (lane-dense) -------------------
    out_flat = pl.pallas_call(
        _bn2_kernel,
        grid=(n, npb),
        in_specs=[
            pl.BlockSpec((None, cout, tp), lambda i, j: (i, 0, j)),
            pl.BlockSpec((cout, 1), lambda i, j: (0, 0)),
            pl.BlockSpec((cout, 1), lambda i, j: (0, 0)),
        ],
        out_specs=pl.BlockSpec((None, cout, tp), lambda i, j: (i, 0, j)),
        out_shape=jax.ShapeDtypeStruct((n, cout, p), x_nchw.dtype),
        compiler_params=pltpu.CompilerParams(
            dimension_semantics=("parallel", "parallel"),
            vmem_limit_bytes=_VMEM_LIMIT_BYTES),
    )(y, scale2, shift2)

    return out_flat.reshape(n, cout, ho, wo)         # already NCHW


def _ref_forward(x, params, stride, padding, eps=1e-5):
    """Pure-JAX reference (mirrors the PyTorch forward, training-mode BN)."""
    wd, bd, w1, b1, g1, be1, g2, be2 = params
    cin = x.shape[1]

    dn = jax.lax.conv_dimension_numbers(x.shape, wd.shape, ('NCHW', 'OIHW', 'NCHW'))
    y = jax.lax.conv_general_dilated(
        x, wd, (stride, stride), [(padding, padding), (padding, padding)],
        dimension_numbers=dn, feature_group_count=cin)
    y = y + bd[None, :, None, None]
    m = y.mean(axis=(0, 2, 3), keepdims=True)
    v = ((y - m) ** 2).mean(axis=(0, 2, 3), keepdims=True)
    y = (y - m) / jnp.sqrt(v + eps) * g1[None, :, None, None] + be1[None, :, None, None]
    y = jnp.clip(y, 0.0, 6.0)

    dn2 = jax.lax.conv_dimension_numbers(y.shape, w1.shape, ('NCHW', 'OIHW', 'NCHW'))
    y = jax.lax.conv_general_dilated(y, w1, (1, 1), [(0, 0), (0, 0)],
                                     dimension_numbers=dn2)
    y = y + b1[None, :, None, None]
    m = y.mean(axis=(0, 2, 3), keepdims=True)
    v = ((y - m) ** 2).mean(axis=(0, 2, 3), keepdims=True)
    y = (y - m) / jnp.sqrt(v + eps) * g2[None, :, None, None] + be2[None, :, None, None]
    return jnp.clip(y, 0.0, 6.0)


if __name__ == "__main__":
    N, CIN, COUT, H, W = 2, 4, 8, 16, 16
    K, S, P = 3, 1, 1

    key = jax.random.PRNGKey(0)
    kx, kd, kp = jax.random.split(key, 3)
    x = jax.random.normal(kx, (N, CIN, H, W), jnp.float32)

    # Deterministic kaiming_normal_(mode='fan_out') style init (shapes match PyTorch).
    wd = jax.random.normal(kd, (CIN, 1, K, K), jnp.float32) * jnp.sqrt(2.0 / (CIN * K * K))
    bd = jnp.zeros((CIN,), jnp.float32)
    w1 = jax.random.normal(kp, (COUT, CIN, 1, 1), jnp.float32) * jnp.sqrt(2.0 / COUT)
    b1 = jnp.zeros((COUT,), jnp.float32)
    g1 = jnp.ones((CIN,), jnp.float32)
    be1 = jnp.zeros((CIN,), jnp.float32)
    g2 = jnp.ones((COUT,), jnp.float32)
    be2 = jnp.zeros((COUT,), jnp.float32)
    params = (wd, bd, w1, b1, g1, be1, g2, be2)

    fwd = jax.jit(functools.partial(dsconv_forward, stride=S, padding=P))
    out = jax.block_until_ready(fwd(x, params))

    ref = _ref_forward(x, params, S, P)
    assert out.shape == (N, COUT, H, W), out.shape
    assert jnp.allclose(out, ref, rtol=1e-4, atol=1e-4), "mismatch vs JAX reference"
    print("KERNEL_OK")
</pallas_src>

<mosaic_0001>
module attributes {stable_mosaic.version = 11 : i64} {
  func.func @_bn2_kernel(%arg0: i32, %arg1: i32, %arg2: memref<1x8x256xf32, #tpu.memory_space<vmem>>, %arg3: memref<8x1xf32, #tpu.memory_space<vmem>>, %arg4: memref<8x1xf32, #tpu.memory_space<vmem>>, %arg5: memref<1x8x256xf32, #tpu.memory_space<vmem>>) attributes {dimension_semantics = [#tpu.dimension_semantics<parallel>, #tpu.dimension_semantics<parallel>], iteration_bounds = array<i64: 2, 1>, scalar_prefetch = 0 : i64, scratch_operands = 0 : i64, tpu.core_type = #tpu.core_type<tc>, window_params = [{transform_indices = @transform_0, window_bounds = array<i64: 1, 8, 256>}, {pipeline_mode = #tpu.pipeline_mode<synchronous>, transform_indices = @transform_1, window_bounds = array<i64: 8, 1>}, {pipeline_mode = #tpu.pipeline_mode<synchronous>, transform_indices = @transform_2, window_bounds = array<i64: 8, 1>}, {transform_indices = @transform_3, window_bounds = array<i64: 1, 8, 256>}]} {
    %c0 = arith.constant 0 : index
    %c0_0 = arith.constant 0 : index
    %c0_1 = arith.constant 0 : index
    %0 = vector.load %arg2[%c0, %c0_0, %c0_1] : memref<1x8x256xf32, #tpu.memory_space<vmem>>, vector<1x8x256xf32>
    %1 = vector.shape_cast %0 : vector<1x8x256xf32> to vector<8x256xf32>
    %c0_2 = arith.constant 0 : index
    %c0_3 = arith.constant 0 : index
    %2 = vector.load %arg3[%c0_2, %c0_3] : memref<8x1xf32, #tpu.memory_space<vmem>>, vector<8x1xf32>
    %3 = vector.broadcast %2 : vector<8x1xf32> to vector<8x256xf32>
    %4 = arith.mulf %1, %3 : vector<8x256xf32>
    %c0_4 = arith.constant 0 : index
    %c0_5 = arith.constant 0 : index
    %5 = vector.load %arg4[%c0_4, %c0_5] : memref<8x1xf32, #tpu.memory_space<vmem>>, vector<8x1xf32>
    %6 = vector.broadcast %5 : vector<8x1xf32> to vector<8x256xf32>
    %7 = arith.addf %4, %6 : vector<8x256xf32>
    %cst = arith.constant 0.000000e+00 : f32
    %cst_6 = arith.constant 6.000000e+00 : f32
    %8 = vector.broadcast %cst : f32 to vector<8x256xf32>
    %9 = arith.maximumf %8, %7 : vector<8x256xf32>
    %10 = vector.broadcast %cst_6 : f32 to vector<8x256xf32>
    %11 = arith.minimumf %10, %9 : vector<8x256xf32>
    %c0_7 = arith.constant 0 : index
    %c0_8 = arith.constant 0 : index
    %c0_9 = arith.constant 0 : index
    %12 = vector.load %arg5[%c0_7, %c0_8, %c0_9] : memref<1x8x256xf32, #tpu.memory_space<vmem>>, vector<1x8x256xf32>
    %13 = vector.shape_cast %12 : vector<1x8x256xf32> to vector<8x256xf32>
    %14 = vector.shape_cast %11 : vector<8x256xf32> to vector<1x8x256xf32>
    tpu.vector_store %arg5[%c0_7, %c0_8, %c0_9], %14 {strides = array<i32>} : memref<1x8x256xf32, #tpu.memory_space<vmem>>, vector<1x8x256xf32>,
    return
  }
  func.func @transform_0(%arg0: i32, %arg1: i32) -> (i32, i32, i32) {
    %c0_i32 = arith.constant 0 : i32
    %c0_i32_0 = arith.constant 0 : i32
    return %arg0, %c0_i32, %arg1 : i32, i32, i32
  }
  func.func @transform_1(%arg0: i32, %arg1: i32) -> (i32, i32) {
    %c0_i32 = arith.constant 0 : i32
    %c0_i32_0 = arith.constant 0 : i32
    %c0_i32_1 = arith.constant 0 : i32
    return %c0_i32, %c0_i32_0 : i32, i32
  }
  func.func @transform_2(%arg0: i32, %arg1: i32) -> (i32, i32) {
    %c0_i32 = arith.constant 0 : i32
    %c0_i32_0 = arith.constant 0 : i32
    %c0_i32_1 = arith.constant 0 : i32
    return %c0_i32, %c0_i32_0 : i32, i32
  }
  func.func @transform_3(%arg0: i32, %arg1: i32) -> (i32, i32, i32) {
    %c0_i32 = arith.constant 0 : i32
    %c0_i32_0 = arith.constant 0 : i32
    return %arg0, %c0_i32, %arg1 : i32, i32, i32
  }
}

module attributes {stable_mosaic.version = 11 : i64} {
  func.func @_dw_stats_kernel(%arg0: i32, %arg1: i32, %arg2: memref<1x4x18x18xf32, #tpu.memory_space<vmem>>, %arg3: memref<4x9xf32, #tpu.memory_space<vmem>>, %arg4: memref<4x1xf32, #tpu.memory_space<vmem>>, %arg5: memref<1x4x16x16xf32, #tpu.memory_space<vmem>>, %arg6: memref<1x4x2xf32, #tpu.memory_space<vmem>>) attributes {dimension_semantics = [#tpu.dimension_semantics<parallel>, #tpu.dimension_semantics<parallel>], iteration_bounds = array<i64: 2, 1>, scalar_prefetch = 0 : i64, scratch_operands = 0 : i64, tpu.core_type = #tpu.core_type<tc>, window_params = [{transform_indices = @transform_0, window_bounds = array<i64: 1, 4, 18, 18>}, {transform_indices = @transform_1, window_bounds = array<i64: 4, 9>}, {transform_indices = @transform_2, window_bounds = array<i64: 4, 1>}, {transform_indices = @transform_3, window_bounds = array<i64: 1, 4, 16, 16>}, {transform_indices = @transform_4, window_bounds = array<i64: 1, 4, 2>}]} {
    %c0 = arith.constant 0 : index
    %c0_0 = arith.constant 0 : index
    %0 = vector.load %arg3[%c0, %c0_0] : memref<4x9xf32, #tpu.memory_space<vmem>>, vector<4x9xf32>
    %cst = arith.constant 0.000000e+00 : f32
    %1 = vector.broadcast %cst : f32 to vector<4x16x16xf32>
    %c0_1 = arith.constant 0 : index
    %c0_2 = arith.constant 0 : index
    %c0_3 = arith.constant 0 : index
    %c0_4 = arith.constant 0 : index
    %2 = vector.load %arg2[%c0_1, %c0_2, %c0_3, %c0_4] : memref<1x4x18x18xf32, #tpu.memory_space<vmem>>, vector<1x4x16x16xf32>
    %3 = vector.shape_cast %2 : vector<1x4x16x16xf32> to vector<4x16x16xf32>
    %4 = vector.extract_strided_slice %0 {offsets = [0, 0], sizes = [4, 1], strides = [1, 1]} : vector<4x9xf32> to vector<4x1xf32>
    %5 = vector.shape_cast %4 : vector<4x1xf32> to vector<4xf32>
    %6 = vector.shape_cast %5 : vector<4xf32> to vector<4x1x1xf32>
    %7 = vector.broadcast %6 : vector<4x1x1xf32> to vector<4x16x16xf32>
    %8 = arith.mulf %3, %7 : vector<4x16x16xf32>
    %9 = arith.addf %1, %8 : vector<4x16x16xf32>
    %c0_5 = arith.constant 0 : index
    %c0_6 = arith.constant 0 : index
    %c0_7 = arith.constant 0 : index
    %c1 = arith.constant 1 : index
    %10 = vector.load %arg2[%c0_5, %c0_6, %c0_7, %c1] : memref<1x4x18x18xf32, #tpu.memory_space<vmem>>, vector<1x4x16x16xf32>
    %11 = vector.shape_cast %10 : vector<1x4x16x16xf32> to vector<4x16x16xf32>
    %12 = vector.extract_strided_slice %0 {offsets = [0, 1], sizes = [4, 1], strides = [1, 1]} : vector<4x9xf32> to vector<4x1xf32>
    %13 = vector.shape_cast %12 : vector<4x1xf32> to vector<4xf32>
    %14 = vector.shape_cast %13 : vector<4xf32> to vector<4x1x1xf32>
    %15 = vector.broadcast %14 : vector<4x1x1xf32> to vector<4x16x16xf32>
    %16 = arith.mulf %11, %15 : vector<4x16x16xf32>
    %17 = arith.addf %9, %16 : vector<4x16x16xf32>
    %c0_8 = arith.constant 0 : index
    %c0_9 = arith.constant 0 : index
    %c0_10 = arith.constant 0 : index
    %c2 = arith.constant 2 : index
    %18 = vector.load %arg2[%c0_8, %c0_9, %c0_10, %c2] : memref<1x4x18x18xf32, #tpu.memory_space<vmem>>, vector<1x4x16x16xf32>
    %19 = vector.shape_cast %18 : vector<1x4x16x16xf32> to vector<4x16x16xf32>
    %20 = vector.extract_strided_slice %0 {offsets = [0, 2], sizes = [4, 1], strides = [1, 1]} : vector<4x9xf32> to vector<4x1xf32>
    %21 = vector.shape_cast %20 : vector<4x1xf32> to vector<4xf32>
    %22 = vector.shape_cast %21 : vector<4xf32> to vector<4x1x1xf32>
    %23 = vector.broadcast %22 : vector<4x1x1xf32> to vector<4x16x16xf32>
    %24 = arith.mulf %19, %23 : vector<4x16x16xf32>
    %25 = arith.addf %17, %24 : vector<4x16x16xf32>
    %c0_11 = arith.constant 0 : index
    %c0_12 = arith.constant 0 : index
    %c1_13 = arith.constant 1 : index
    %c0_14 = arith.constant 0 : index
    %26 = vector.load %arg2[%c0_11, %c0_12, %c1_13, %c0_14] : memref<1x4x18x18xf32, #tpu.memory_space<vmem>>, vector<1x4x16x16xf32>
    %27 = vector.shape_cast %26 : vector<1x4x16x16xf32> to vector<4x16x16xf32>
    %28 = vector.extract_strided_slice %0 {offsets = [0, 3], sizes = [4, 1], strides = [1, 1]} : vector<4x9xf32> to vector<4x1xf32>
    %29 = vector.shape_cast %28 : vector<4x1xf32> to vector<4xf32>
    %30 = vector.shape_cast %29 : vector<4xf32> to vector<4x1x1xf32>
    %31 = vector.broadcast %30 : vector<4x1x1xf32> to vector<4x16x16xf32>
    %32 = arith.mulf %27, %31 : vector<4x16x16xf32>
    %33 = arith.addf %25, %32 : vector<4x16x16xf32>
    %c0_15 = arith.constant 0 : index
    %c0_16 = arith.constant 0 : index
    %c1_17 = arith.constant 1 : index
    %c1_18 = arith.constant 1 : index
    %34 = vector.load %arg2[%c0_15, %c0_16, %c1_17, %c1_18] : memref<1x4x18x18xf32, #tpu.memory_space<vmem>>, vector<1x4x16x16xf32>
    %35 = vector.shape_cast %34 : vector<1x4x16x16xf32> to vector<4x16x16xf32>
    %36 = vector.extract_strided_slice %0 {offsets = [0, 4], sizes = [4, 1], strides = [1, 1]} : vector<4x9xf32> to vector<4x1xf32>
    %37 = vector.shape_cast %36 : vector<4x1xf32> to vector<4xf32>
    %38 = vector.shape_cast %37 : vector<4xf32> to vector<4x1x1xf32>
    %39 = vector.broadcast %38 : vector<4x1x1xf32> to vector<4x16x16xf32>
    %40 = arith.mulf %35, %39 : vector<4x16x16xf32>
    %41 = arith.addf %33, %40 : vector<4x16x16xf32>
    %c0_19 = arith.constant 0 : index
    %c0_20 = arith.constant 0 : index
    %c1_21 = arith.constant 1 : index
    %c2_22 = arith.constant 2 : index
    %42 = vector.load %arg2[%c0_19, %c0_20, %c1_21, %c2_22] : memref<1x4x18x18xf32, #tpu.memory_space<vmem>>, vector<1x4x16x16xf32>
    %43 = vector.shape_cast %42 : vector<1x4x16x16xf32> to vector<4x16x16xf32>
    %44 = vector.extract_strided_slice %0 {offsets = [0, 5], sizes = [4, 1], strides = [1, 1]} : vector<4x9xf32> to vector<4x1xf32>
    %45 = vector.shape_cast %44 : vector<4x1xf32> to vector<4xf32>
    %46 = vector.shape_cast %45 : vector<4xf32> to vector<4x1x1xf32>
    %47 = vector.broadcast %46 : vector<4x1x1xf32> to vector<4x16x16xf32>
    %48 = arith.mulf %43, %47 : vector<4x16x16xf32>
    %49 = arith.addf %41, %48 : vector<4x16x16xf32>
    %c0_23 = arith.constant 0 : index
    %c0_24 = arith.constant 0 : index
    %c2_25 = arith.constant 2 : index
    %c0_26 = arith.constant 0 : index
    %50 = vector.load %arg2[%c0_23, %c0_24, %c2_25, %c0_26] : memref<1x4x18x18xf32, #tpu.memory_space<vmem>>, vector<1x4x16x16xf32>
    %51 = vector.shape_cast %50 : vector<1x4x16x16xf32> to vector<4x16x16xf32>
    %52 = vector.extract_strided_slice %0 {offsets = [0, 6], sizes = [4, 1], strides = [1, 1]} : vector<4x9xf32> to vector<4x1xf32>
    %53 = vector.shape_cast %52 : vector<4x1xf32> to vector<4xf32>
    %54 = vector.shape_cast %53 : vector<4xf32> to vector<4x1x1xf32>
    %55 = vector.broadcast %54 : vector<4x1x1xf32> to vector<4x16x16xf32>
    %56 = arith.mulf %51, %55 : vector<4x16x16xf32>
    %57 = arith.addf %49, %56 : vector<4x16x16xf32>
    %c0_27 = arith.constant 0 : index
    %c0_28 = arith.constant 0 : index
    %c2_29 = arith.constant 2 : index
    %c1_30 = arith.constant 1 : index
    %58 = vector.load %arg2[%c0_27, %c0_28, %c2_29, %c1_30] : memref<1x4x18x18xf32, #tpu.memory_space<vmem>>, vector<1x4x16x16xf32>
    %59 = vector.shape_cast %58 : vector<1x4x16x16xf32> to vector<4x16x16xf32>
    %60 = vector.extract_strided_slice %0 {offsets = [0, 7], sizes = [4, 1], strides = [1, 1]} : vector<4x9xf32> to vector<4x1xf32>
    %61 = vector.shape_cast %60 : vector<4x1xf32> to vector<4xf32>
    %62 = vector.shape_cast %61 : vector<4xf32> to vector<4x1x1xf32>
    %63 = vector.broadcast %62 : vector<4x1x1xf32> to vector<4x16x16xf32>
    %64 = arith.mulf %59, %63 : vector<4x16x16xf32>
    %65 = arith.addf %57, %64 : vector<4x16x16xf32>
    %c0_31 = arith.constant 0 : index
    %c0_32 = arith.constant 0 : index
    %c2_33 = arith.constant 2 : index
    %c2_34 = arith.constant 2 : index
    %66 = vector.load %arg2[%c0_31, %c0_32, %c2_33, %c2_34] : memref<1x4x18x18xf32, #tpu.memory_space<vmem>>, vector<1x4x16x16xf32>
    %67 = vector.shape_cast %66 : vector<1x4x16x16xf32> to vector<4x16x16xf32>
    %68 = vector.extract_strided_slice %0 {offsets = [0, 8], sizes = [4, 1], strides = [1, 1]} : vector<4x9xf32> to vector<4x1xf32>
    %69 = vector.shape_cast %68 : vector<4x1xf32> to vector<4xf32>
    %70 = vector.shape_cast %69 : vector<4xf32> to vector<4x1x1xf32>
    %71 = vector.broadcast %70 : vector<4x1x1xf32> to vector<4x16x16xf32>
    %72 = arith.mulf %67, %71 : vector<4x16x16xf32>
    %73 = arith.addf %65, %72 : vector<4x16x16xf32>
    %c0_35 = arith.constant 0 : index
    %c0_36 = arith.constant 0 : index
    %74 = vector.load %arg4[%c0_35, %c0_36] : memref<4x1xf32, #tpu.memory_space<vmem>>, vector<4x1xf32>
    %75 = vector.shape_cast %74 : vector<4x1xf32> to vector<4x1x1xf32>
    %76 = vector.broadcast %75 : vector<4x1x1xf32> to vector<4x16x16xf32>
    %77 = arith.addf %73, %76 : vector<4x16x16xf32>
    %c0_37 = arith.constant 0 : index
    %c0_38 = arith.constant 0 : index
    %c0_39 = arith.constant 0 : index
    %c0_40 = arith.constant 0 : index
    %78 = vector.load %arg5[%c0_37, %c0_38, %c0_39, %c0_40] : memref<1x4x16x16xf32, #tpu.memory_space<vmem>>, vector<1x4x16x16xf32>
    %79 = vector.shape_cast %78 : vector<1x4x16x16xf32> to vector<4x16x16xf32>
    %80 = vector.shape_cast %77 : vector<4x16x16xf32> to vector<1x4x16x16xf32>
    tpu.vector_store %arg5[%c0_37, %c0_38, %c0_39, %c0_40], %80 {strides = array<i32>} : memref<1x4x16x16xf32, #tpu.memory_space<vmem>>, vector<1x4x16x16xf32>,
    %cst_41 = arith.constant dense<0.000000e+00> : vector<4x16xf32>
    %81 = vector.multi_reduction <add>, %77, %cst_41 [2] : vector<4x16x16xf32> to vector<4x16xf32>
    %cst_42 = arith.constant dense<0.000000e+00> : vector<4xf32>
    %82 = vector.multi_reduction <add>, %81, %cst_42 [1] : vector<4x16xf32> to vector<4xf32>
    %83 = vector.shape_cast %82 : vector<4xf32> to vector<4x1xf32>
    %84 = arith.mulf %77, %77 : vector<4x16x16xf32>
    %cst_43 = arith.constant dense<0.000000e+00> : vector<4x16xf32>
    %85 = vector.multi_reduction <add>, %84, %cst_43 [2] : vector<4x16x16xf32> to vector<4x16xf32>
    %cst_44 = arith.constant dense<0.000000e+00> : vector<4xf32>
    %86 = vector.multi_reduction <add>, %85, %cst_44 [1] : vector<4x16xf32> to vector<4xf32>
    %87 = vector.shape_cast %86 : vector<4xf32> to vector<4x1xf32>
    %88 = tpu.concatenate %83, %87 in 1 : vector<4x1xf32>, vector<4x1xf32> -> vector<4x2xf32>
    %c0_45 = arith.constant 0 : index
    %c0_46 = arith.constant 0 : index
    %c0_47 = arith.constant 0 : index
    %89 = vector.load %arg6[%c0_45, %c0_46, %c0_47] : memref<1x4x2xf32, #tpu.memory_space<vmem>>, vector<1x4x2xf32>
    %90 = vector.shape_cast %89 : vector<1x4x2xf32> to vector<4x2xf32>
    %91 = vector.shape_cast %88 : vector<4x2xf32> to vector<1x4x2xf32>
    tpu.vector_store %arg6[%c0_45, %c0_46, %c0_47], %91 {strides = array<i32>} : memref<1x4x2xf32, #tpu.memory_space<vmem>>, vector<1x4x2xf32>,
    return
  }
  func.func @transform_0(%arg0: i32, %arg1: i32) -> (i32, i32, i32, i32) {
    %c0_i32 = arith.constant 0 : i32
    %c0_i32_0 = arith.constant 0 : i32
    %c0_i32_1 = arith.constant 0 : i32
    return %arg0, %arg1, %c0_i32, %c0_i32_0 : i32, i32, i32, i32
  }
  func.func @transform_1(%arg0: i32, %arg1: i32) -> (i32, i32) {
    %c0_i32 = arith.constant 0 : i32
    %c0_i32_0 = arith.constant 0 : i32
    return %arg1, %c0_i32 : i32, i32
  }
  func.func @transform_2(%arg0: i32, %arg1: i32) -> (i32, i32) {
    %c0_i32 = arith.constant 0 : i32
    %c0_i32_0 = arith.constant 0 : i32
    return %arg1, %c0_i32 : i32, i32
  }
  func.func @transform_3(%arg0: i32, %arg1: i32) -> (i32, i32, i32, i32) {
    %c0_i32 = arith.constant 0 : i32
    %c0_i32_0 = arith.constant 0 : i32
    %c0_i32_1 = arith.constant 0 : i32
    return %arg0, %arg1, %c0_i32, %c0_i32_0 : i32, i32, i32, i32
  }
  func.func @transform_4(%arg0: i32, %arg1: i32) -> (i32, i32, i32) {
    %c0_i32 = arith.constant 0 : i32
    %c0_i32_0 = arith.constant 0 : i32
    return %arg0, %arg1, %c0_i32 : i32, i32, i32
  }
}

module attributes {stable_mosaic.version = 11 : i64} {
  func.func @_bn1_pw_stats_kernel(%arg0: i32, %arg1: i32, %arg2: memref<1x4x256xf32, #tpu.memory_space<vmem>>, %arg3: memref<4x1xf32, #tpu.memory_space<vmem>>, %arg4: memref<4x1xf32, #tpu.memory_space<vmem>>, %arg5: memref<8x4xf32, #tpu.memory_space<vmem>>, %arg6: memref<8x1xf32, #tpu.memory_space<vmem>>, %arg7: memref<1x8x256xf32, #tpu.memory_space<vmem>>, %arg8: memref<1x1x8x2xf32, #tpu.memory_space<vmem>>) attributes {dimension_semantics = [#tpu.dimension_semantics<parallel>, #tpu.dimension_semantics<parallel>], iteration_bounds = array<i64: 2, 1>, scalar_prefetch = 0 : i64, scratch_operands = 0 : i64, tpu.core_type = #tpu.core_type<tc>, window_params = [{transform_indices = @transform_0, window_bounds = array<i64: 1, 4, 256>}, {pipeline_mode = #tpu.pipeline_mode<synchronous>, transform_indices = @transform_1, window_bounds = array<i64: 4, 1>}, {pipeline_mode = #tpu.pipeline_mode<synchronous>, transform_indices = @transform_2, window_bounds = array<i64: 4, 1>}, {pipeline_mode = #tpu.pipeline_mode<synchronous>, transform_indices = @transform_3, window_bounds = array<i64: 8, 4>}, {pipeline_mode = #tpu.pipeline_mode<synchronous>, transform_indices = @transform_4, window_bounds = array<i64: 8, 1>}, {transform_indices = @transform_5, window_bounds = array<i64: 1, 8, 256>}, {transform_indices = @transform_6, window_bounds = array<i64: 1, 1, 8, 2>}]} {
    %c0 = arith.constant 0 : index
    %c0_0 = arith.constant 0 : index
    %c0_1 = arith.constant 0 : index
    %0 = vector.load %arg2[%c0, %c0_0, %c0_1] : memref<1x4x256xf32, #tpu.memory_space<vmem>>, vector<1x4x256xf32>
    %1 = vector.shape_cast %0 : vector<1x4x256xf32> to vector<4x256xf32>
    %c0_2 = arith.constant 0 : index
    %c0_3 = arith.constant 0 : index
    %2 = vector.load %arg3[%c0_2, %c0_3] : memref<4x1xf32, #tpu.memory_space<vmem>>, vector<4x1xf32>
    %3 = vector.broadcast %2 : vector<4x1xf32> to vector<4x256xf32>
    %4 = arith.mulf %1, %3 : vector<4x256xf32>
    %c0_4 = arith.constant 0 : index
    %c0_5 = arith.constant 0 : index
    %5 = vector.load %arg4[%c0_4, %c0_5] : memref<4x1xf32, #tpu.memory_space<vmem>>, vector<4x1xf32>
    %6 = vector.broadcast %5 : vector<4x1xf32> to vector<4x256xf32>
    %7 = arith.addf %4, %6 : vector<4x256xf32>
    %cst = arith.constant 0.000000e+00 : f32
    %cst_6 = arith.constant 6.000000e+00 : f32
    %8 = vector.broadcast %cst : f32 to vector<4x256xf32>
    %9 = arith.maximumf %8, %7 : vector<4x256xf32>
    %10 = vector.broadcast %cst_6 : f32 to vector<4x256xf32>
    %11 = arith.minimumf %10, %9 : vector<4x256xf32>
    %c0_7 = arith.constant 0 : index
    %c0_8 = arith.constant 0 : index
    %12 = vector.load %arg5[%c0_7, %c0_8] : memref<8x4xf32, #tpu.memory_space<vmem>>, vector<8x4xf32>
    %cst_9 = arith.constant dense<0.000000e+00> : vector<8x256xf32>
    %13 = tpu.matmul %12, %11, %cst_9 {dimension_numbers = #tpu.dot_dimension_numbers<[1], [0], [0], [1], [0, 0, 1, 1], [], []>} : vector<8x4xf32>, vector<4x256xf32>, vector<8x256xf32> -> vector<8x256xf32>
    %c0_10 = arith.constant 0 : index
    %c0_11 = arith.constant 0 : index
    %14 = vector.load %arg6[%c0_10, %c0_11] : memref<8x1xf32, #tpu.memory_space<vmem>>, vector<8x1xf32>
    %15 = vector.broadcast %14 : vector<8x1xf32> to vector<8x256xf32>
    %16 = arith.addf %13, %15 : vector<8x256xf32>
    %c0_12 = arith.constant 0 : index
    %c0_13 = arith.constant 0 : index
    %c0_14 = arith.constant 0 : index
    %17 = vector.load %arg7[%c0_12, %c0_13, %c0_14] : memref<1x8x256xf32, #tpu.memory_space<vmem>>, vector<1x8x256xf32>
    %18 = vector.shape_cast %17 : vector<1x8x256xf32> to vector<8x256xf32>
    %19 = vector.shape_cast %16 : vector<8x256xf32> to vector<1x8x256xf32>
    tpu.vector_store %arg7[%c0_12, %c0_13, %c0_14], %19 {strides = array<i32>} : memref<1x8x256xf32, #tpu.memory_space<vmem>>, vector<1x8x256xf32>,
    %cst_15 = arith.constant dense<0.000000e+00> : vector<8xf32>
    %20 = vector.multi_reduction <add>, %16, %cst_15 [1] : vector<8x256xf32> to vector<8xf32>
    %21 = vector.shape_cast %20 : vector<8xf32> to vector<8x1xf32>
    %22 = arith.mulf %16, %16 : vector<8x256xf32>
    %cst_16 = arith.constant dense<0.000000e+00> : vector<8xf32>
    %23 = vector.multi_reduction <add>, %22, %cst_16 [1] : vector<8x256xf32> to vector<8xf32>
    %24 = vector.shape_cast %23 : vector<8xf32> to vector<8x1xf32>
    %25 = tpu.concatenate %21, %24 in 1 : vector<8x1xf32>, vector<8x1xf32> -> vector<8x2xf32>
    %c0_17 = arith.constant 0 : index
    %c0_18 = arith.constant 0 : index
    %c0_19 = arith.constant 0 : index
    %c0_20 = arith.constant 0 : index
    %26 = vector.load %arg8[%c0_17, %c0_18, %c0_19, %c0_20] : memref<1x1x8x2xf32, #tpu.memory_space<vmem>>, vector<1x1x8x2xf32>
    %27 = vector.shape_cast %26 : vector<1x1x8x2xf32> to vector<8x2xf32>
    %28 = vector.shape_cast %25 : vector<8x2xf32> to vector<1x1x8x2xf32>
    tpu.vector_store %arg8[%c0_17, %c0_18, %c0_19, %c0_20], %28 {strides = array<i32>} : memref<1x1x8x2xf32, #tpu.memory_space<vmem>>, vector<1x1x8x2xf32>,
    return
  }
  func.func @transform_0(%arg0: i32, %arg1: i32) -> (i32, i32, i32) {
    %c0_i32 = arith.constant 0 : i32
    %c0_i32_0 = arith.constant 0 : i32
    return %arg0, %c0_i32, %arg1 : i32, i32, i32
  }
  func.func @transform_1(%arg0: i32, %arg1: i32) -> (i32, i32) {
    %c0_i32 = arith.constant 0 : i32
    %c0_i32_0 = arith.constant 0 : i32
    %c0_i32_1 = arith.constant 0 : i32
    return %c0_i32, %c0_i32_0 : i32, i32
  }
  func.func @transform_2(%arg0: i32, %arg1: i32) -> (i32, i32) {
    %c0_i32 = arith.constant 0 : i32
    %c0_i32_0 = arith.constant 0 : i32
    %c0_i32_1 = arith.constant 0 : i32
    return %c0_i32, %c0_i32_0 : i32, i32
  }
  func.func @transform_3(%arg0: i32, %arg1: i32) -> (i32, i32) {
    %c0_i32 = arith.constant 0 : i32
    %c0_i32_0 = arith.constant 0 : i32
    %c0_i32_1 = arith.constant 0 : i32
    return %c0_i32, %c0_i32_0 : i32, i32
  }
  func.func @transform_4(%arg0: i32, %arg1: i32) -> (i32, i32) {
    %c0_i32 = arith.constant 0 : i32
    %c0_i32_0 = arith.constant 0 : i32
    %c0_i32_1 = arith.constant 0 : i32
    return %c0_i32, %c0_i32_0 : i32, i32
  }
  func.func @transform_5(%arg0: i32, %arg1: i32) -> (i32, i32, i32) {
    %c0_i32 = arith.constant 0 : i32
    %c0_i32_0 = arith.constant 0 : i32
    return %arg0, %c0_i32, %arg1 : i32, i32, i32
  }
  func.func @transform_6(%arg0: i32, %arg1: i32) -> (i32, i32, i32, i32) {
    %c0_i32 = arith.constant 0 : i32
    %c0_i32_0 = arith.constant 0 : i32
    %c0_i32_1 = arith.constant 0 : i32
    return %arg0, %arg1, %c0_i32, %c0_i32_0 : i32, i32, i32, i32
  }
}

</mosaic_0001>

<bundles_post_ra>
// kernel: dsconv_forward.4
= control target key start
LH: loop header
LB: loop body
LE: loop exit
PB: predicated region body
PF: predicated region fallthrough
CT: control target
= control target key end

     0   :  { %s644_s21 = smov 0   ;;  %s646_s22 = smov 0   ;;  %s700_s0 = inlined_call_operand.vmem [shape: f32[2,4,256], index: 0, kind: input, shape index: {}]   ;;  %s701_s1 = inlined_call_operand.vmem [shape: f32[4,1], index: 1, kind: input, shape index: {}]   ;;  %s702_s2 = inlined_call_operand.vmem [shape: f32[4,1], index: 2, kind: input, shape index: {}]   ;;  %s703_s3 = inlined_call_operand.vmem [shape: f32[8,4], index: 3, kind: input, shape index: {}]   ;;  %s704_s4 = inlined_call_operand.vmem [shape: f32[8,1], index: 4, kind: input, shape index: {}]   ;;  %s705_s5 = inlined_call_operand.vmem [shape: f32[2,8,256], index: 5, kind: output, shape index: {0}]   ;;  %s706_s6 = inlined_call_operand.vmem [shape: f32[2,1,8,2], index: 6, kind: output, shape index: {1}]  }
   0x1   :  { %s648_s23 = smov 0  }
   0x2 LB: > { %s29_s24 = sadd.s32 1, %s601_s22  ;;  %p541_p0 = scmp.ge.s32.totalorder %s605_s23, 1  ;;  %s605_s23 = sphi %s648_s23, %s17_s23   ;;  %s601_s22 = sphi %s646_s22, %s708_s22   ;;  %s597_s21 = sphi %s644_s21, %s707_s21  }
   0x3   : > { %p31_p1 = scmp.ge.s32.totalorder %s29_s24, 2  ;;  %p238_p2 = scmp.lt.s32.totalorder %s605_s23, 3 }
   0x5   : > { %s710_s24 = smov (%p31_p1, %s29_s24), 0  ;;  %p239_p3 = pnand %p541_p0, %p238_p2 }
   0x6   : > { %p284_p4 = scmp.lt.s32.totalorder (!%p239_p3), %s597_s21, 1 }
   0x7   : > { %242 = sbr.rel (%p239_p3) target bundleno = 404 (0x194), region = 40 }
   0xc   : > { %v311_v0 = vld [vmem:[%s701_s1] sm:$0xf]  ;;  %v607_v1 = vmov 0   ;;  %s712_s21 = smov (!%p284_p4, %s597_s21), 1  ;;  %v608_v4 = vmov 839922192  }
   0xd   : > { %581 = vset.pattern.permute.xlu0 %v607_v1  ;;  %582 = vset.pattern.permute.xlu1 %v607_v1  ;;  %v322_v2 = vld [vmem:[%s702_s2] sm:$0xf]  ;;  %v317_v5 = vunpack.c.l.s4 %v608_v4  ;;  %s553_s7 = sshll.u32 %s712_s21, 3  ;;  %vm350_vm0 = vcmask 1043456   ;;  %vm346_vm1 = vcmask 31744   ;;  %s554_s13 = sshll.u32 %s712_s21, 4 }
   0xe   : > { %314 = vperm.xlu0 %581, %v311_v0   ;;  %v336_v3 = vld [vmem:[%s704_s4] sm:$0xff]  ;;  %s291_s10 = scalar_lea.vmem %s700_s0, %s553_s7  ;;  %s301_s16 = scalar_lea.vmem %s705_s5, %s554_s13  ;;  %vm405_vm2 = vcmask 7168   ;;  %vm407_vm3 = vcmask 15360  }
   0xf   : > { %339 = vperm.xlu1 %582, %v336_v3   ;;  %v318_v7 = vunpack.c.0.s8 %v317_v5  ;;  %v310_v9 = vld [vmem:[%s291_s10] sm:$0xff]  ;;  %s309_s19 = scalar_lea.vmem %s706_s6, %s553_s7 }
  0x10   : > { %v335_v16 = vld [vmem:[%s703_s3] sm:$0xff] }
  0x16   : > { %325 = vperm.xlu0 %581, %v322_v2  }
  0x80   : > { %v315_v6 = vpop.permute.xlu0 %314 }
  0x81   : > { %v319_v8 = vperm.slane %v315_v6, %v318_v7  ;;  %v340_v19 = vpop.permute.xlu1 %339 }
  0x83   : > { %v321_v11 = vmul.f32 %v319_v8, %v310_v9 }
  0x88   : > { %v326_v10 = vpop.permute.xlu0 %325 }
  0x89   : > { %v330_v12 = vperm.slane %v326_v10, %v318_v7 }
  0x8b   : > { %v332_v13 = vadd.f32 %v330_v12, %v321_v11 }
  0x8d   : > { %v333_v14 = vmax.f32 %v332_v13, 0.0 }
  0x8f   : > { %v334_v15 = vmin.f32 %v333_v14, 6.0 }
  0x91   : > { %343 = vst [vmem:[#allocation1] ss:$2 sm:$0xff] %v334_v15 }
  0x98   : > { %v344_v17 = vld.sshfl [vmem:[#allocation1] sm:$0xff pattern:$0x75316420]  ;;  %v345_v18 = vld.sshfl [vmem:[#allocation1 + $0x8] sm:$0xff pattern:$0x75316420] }
  0x99   : > { %547 = vmatpush.msk.msra.mxu0 %vm350_vm0, %v344_v17  ;;  %549 = vmatpush.msk.msra.mxu1 %vm350_vm0, %v345_v18 }
  0x9a   : > { %548 = vmatmul.msk.f32.vlgmr.msra.gmra.mxu0 %vm346_vm1, %v335_v16  ;;  %550 = vmatmul.msk.f32.vlgmr.msra.gmra.mxu1 %vm346_vm1, %v335_v16 }
 0x117   : > { %v372_v20 = vpop.f32.mrf.mxu0  ;;  %v392_v21 = vpop.f32.mrf.mxu1 }
 0x118   : > { %v373_v22 = vadd.f32 %v372_v20, %v340_v19  ;;  %v393_v23 = vadd.f32 %v392_v21, %v340_v19 }
 0x11a   : > { %395 = vst [vmem:[%s301_s16] sm:$0xff] %v373_v22  ;;  %v397_v24 = vadd.f32 %v393_v23, %v373_v22  ;;  %v400_v25 = vmul.f32 %v373_v22, %v373_v22  ;;  %v401_v26 = vmul.f32 %v393_v23, %v393_v23 }
 0x11b   : > { %396 = vst [vmem:[%s301_s16 + $0x8] sm:$0xff] %v393_v23 }
 0x11c   : > { %398 = vadd.xlane.f32.xlu1 %v397_v24  ;;  %v402_v27 = vadd.f32 %v401_v26, %v400_v25 }
 0x11e   : > { %403 = vadd.xlane.f32.xlu2 %v402_v27 }
 0x18f   : > { %v399_v28 = vpop.xlane.xlu1 %398 }
 0x191   : > { %v404_v29 = vpop.xlane.xlu2 %403 }
 0x192   : > { %v406_v30 = vsel %vm405_vm2, %v399_v28, %v404_v29 }
 0x193   : > { %408 = vst.msk [vmem:[%s309_s19] sm:$0xff] %vm407_vm3, %v406_v30 }
 0x194 PF: > { %s17_s23 = sadd.s32 1, %s605_s23   ;;  %s707_s21 = smov %s601_s22 }
 0x195   : > { %p14_p5 = scmp.ge.s32.totalorder %s17_s23, 4   ;;  %s708_s22 = smov %s710_s24 }
 0x197   :  { %16 = sbr.rel (!%p14_p5) target bundleno = 2 (0x2), region = 82 }

// kernel: dsconv_forward.5
= control target key start
LH: loop header
LB: loop body
LE: loop exit
PB: predicated region body
PF: predicated region fallthrough
CT: control target
= control target key end

     0   :  { %s405_s12 = smov 0   ;;  %s407_s13 = smov 0   ;;  %s444_s0 = inlined_call_operand.vmem [shape: f32[2,8,256], index: 0, kind: input, shape index: {}]   ;;  %s445_s1 = inlined_call_operand.vmem [shape: f32[8,1], index: 1, kind: input, shape index: {}]   ;;  %s446_s2 = inlined_call_operand.vmem [shape: f32[8,1], index: 2, kind: input, shape index: {}]   ;;  %s447_s3 = inlined_call_operand.vmem [shape: f32[2,8,256], index: 3, kind: output, shape index: {}]  }
   0x1   :  { %s409_s14 = smov 0  }
   0x2 LB: > { %s25_s15 = sadd.s32 1, %s378_s13  ;;  %p325_p0 = scmp.ge.s32.totalorder %s382_s14, 1  ;;  %s382_s14 = sphi %s409_s14, %s13_s14   ;;  %s378_s13 = sphi %s407_s13, %s449_s13   ;;  %s374_s12 = sphi %s405_s12, %s448_s12  }
   0x3   : > { %p27_p1 = scmp.ge.s32.totalorder %s25_s15, 2  ;;  %p158_p2 = scmp.lt.s32.totalorder %s382_s14, 3 }
   0x5   : > { %s451_s15 = smov (%p27_p1, %s25_s15), 0  ;;  %p159_p3 = pnand %p325_p0, %p158_p2 }
   0x6   : > { %p191_p4 = scmp.lt.s32.totalorder (!%p159_p3), %s374_s12, 1 }
   0x7   : > { %162 = sbr.rel (%p159_p3) target bundleno = 145 (0x91), region = 32 }
   0xc   : > { %v212_v0 = vld [vmem:[%s445_s1] sm:$0xff]  ;;  %v384_v1 = vmov 0   ;;  %s453_s12 = smov (!%p191_p4, %s374_s12), 1 }
   0xd   : > { %359 = vset.pattern.permute.xlu0 %v384_v1  ;;  %v220_v2 = vld [vmem:[%s446_s2] sm:$0xff]  ;;  %s332_s20 = sshll.u32 %s453_s12, 4 }
   0xe   : > { %215 = vperm.xlu0 %359, %v212_v0   ;;  %s198_s23 = scalar_lea.vmem %s444_s0, %s332_s20  ;;  %s208_s26 = scalar_lea.vmem %s447_s3, %s332_s20 }
   0xf   : > { %v210_v4 = vld [vmem:[%s198_s23] sm:$0xff]  ;;  %v211_v5 = vld [vmem:[%s198_s23 + $0x8] sm:$0xff] }
  0x16   : > { %223 = vperm.xlu0 %359, %v220_v2  }
  0x80   : > { %v216_v3 = vpop.permute.xlu0 %215 }
  0x81   : > { %v218_v6 = vmul.f32 %v216_v3, %v210_v4  ;;  %v219_v7 = vmul.f32 %v216_v3, %v211_v5 }
  0x88   : > { %v224_v8 = vpop.permute.xlu0 %223 }
  0x89   : > { %v226_v9 = vadd.f32 %v224_v8, %v218_v6  ;;  %v227_v10 = vadd.f32 %v224_v8, %v219_v7 }
  0x8b   : > { %v228_v11 = vmax.f32 %v226_v9, 0.0  ;;  %v229_v12 = vmax.f32 %v227_v10, 0.0 }
  0x8d   : > { %v230_v13 = vmin.f32 %v228_v11, 6.0  ;;  %v231_v14 = vmin.f32 %v229_v12, 6.0 }
  0x8f   : > { %232 = vst [vmem:[%s208_s26] sm:$0xff] %v230_v13 }
  0x90   : > { %233 = vst [vmem:[%s208_s26 + $0x8] sm:$0xff] %v231_v14 }
  0x91 PF: > { %s13_s14 = sadd.s32 1, %s382_s14   ;;  %s448_s12 = smov %s378_s13 }
  0x92   : > { %p10_p5 = scmp.ge.s32.totalorder %s13_s14, 4   ;;  %s449_s13 = smov %s451_s15 }
  0x94   :  { %12 = sbr.rel (!%p10_p5) target bundleno = 2 (0x2), region = 62 }

// kernel: dsconv_forward.3
= control target key start
LH: loop header
LB: loop body
LE: loop exit
PB: predicated region body
PF: predicated region fallthrough
CT: control target
= control target key end

     0   :  { %s1276_s15 = smov 0   ;;  %s1278_s16 = smov 0   ;;  %s1703_s0 = inlined_call_operand.vmem [shape: f32[2,4,18,18], index: 0, kind: input, shape index: {}]   ;;  %s1704_s1 = inlined_call_operand.vmem [shape: f32[4,9], index: 1, kind: input, shape index: {}]   ;;  %s1705_s2 = inlined_call_operand.vmem [shape: f32[4,1], index: 2, kind: input, shape index: {}]   ;;  %s1706_s3 = inlined_call_operand.vmem [shape: f32[2,4,16,16], index: 3, kind: output, shape index: {0}]   ;;  %s1707_s4 = inlined_call_operand.vmem [shape: f32[2,4,2], index: 4, kind: output, shape index: {1}]  }
   0x1   :  { %s1280_s17 = smov 0  }
   0x2 LB: > { %s27_s18 = sadd.s32 1, %s1234_s16  ;;  %p1145_p0 = scmp.ge.s32.totalorder %s1238_s17, 1  ;;  %s1238_s17 = sphi %s1280_s17, %s15_s17   ;;  %s1234_s16 = sphi %s1278_s16, %s1709_s16   ;;  %s1230_s15 = sphi %s1276_s15, %s1708_s15  }
   0x3   : > { %p29_p1 = scmp.ge.s32.totalorder %s27_s18, 2  ;;  %p207_p2 = scmp.lt.s32.totalorder %s1238_s17, 3 }
   0x5   : > { %s1711_s18 = smov (%p29_p1, %s27_s18), 0  ;;  %p208_p3 = pnand %p1145_p0, %p207_p2 }
   0x6   : > { %p259_p4 = scmp.lt.s32.totalorder (!%p208_p3), %s1230_s15, 1  ;;  %s1245_s25 = smov (!%p208_p3), 127  }
   0x7   : > { %211 = sbr.rel (%p208_p3) target bundleno = 904 (0x388), region = 32  ;;  %s1246_s26 = smov (!%p208_p3), 126  }
   0xc   : > { %v295_v0 = vld [vmem:[%s1704_s1] sm:$0xf]  ;;  %v1240_v1 = vmov 1   ;;  %v1241_v3 = vmov 0   ;;  %v1242_v10 = vmov 2   ;;  %v1243_v11 = vmov 3  }
   0xd   : > { %1190 = vset.pattern.permute.xlu2 %v1240_v1  ;;  %v1299_v2 = vperm.slane %v295_v0, 0  ;;  %1189 = vset.pattern.permute.xlu1 %v1241_v3  ;;  %v306_v4 = vrot.slane %v295_v0, 2  ;;  %v305_v6 = vrot.slane %v295_v0, 1  ;;  %v307_v7 = vrot.slane %v295_v0, 3  ;;  %s1713_s15 = smov (!%p259_p4, %s1230_s15), 1 }
   0xe   : > { %1191 = vset.pattern.permute.xlu0 %v1240_v1  ;;  %v1244_v12 = vmov 4   ;;  %s1153_s21 = smul.u32 96, %s1713_s15  ;;  %v1247_v51 = vmov 5   ;;  %s1152_s29 = sshll.u32 %s1713_s15, 6  ;;  %vm841_vm0 = vcmask 130048   ;;  %vm887_vm1 = vcmask 130112  }
   0xf   : > { %345 = vperm.xlu2 %1190, %v1299_v2   ;;  %v1303_v5 = vperm.slane %v306_v4, 0  ;;  %v1307_v8 = vperm.slane %v305_v6, 0  ;;  %v1309_v9 = vperm.slane %v307_v7, 0  ;;  %s1634_s6 = scalar_lea.vmem %s1706_s3, %s1152_s29  ;;  %vm898_vm2 = vcmask 1041409   ;;  %s1149_s7 = sshll.u32 %s1713_s15, 2 }
  0x10   : > { %s1334_s24 = scalar_lea.vmem %s1703_s0, %s1153_s21  ;;  %vm902_vm3 = vcmask 1043459   ;;  %vm900_vm4 = vcmask 1042434   ;;  %vm905_vm5 = vcmask 125952   ;;  %vm968_vm6 = vcmask 7168   ;;  %s294_s10 = scalar_lea.vmem %s1707_s4, %s1149_s7 }
  0x11   : > { %321 = vperm.xlu1 %1189, %v1303_v5   ;;  %353 = vperm.xlu0 %1191, %v1303_v5   ;;  %v1337_v13 = vld [vmem:[%s1334_s24] sm:$0xff]  ;;  %v1340_v14 = vld [vmem:[%s1334_s24 + $0x8] sm:$0xff]  ;;  %v300_v24 = vld [vmem:[%s1334_s24 + $0x30] sm:$0xff]  ;;  %vm970_vm7 = vcmask 11264  }
  0x12   : > { %v1347_v18 = vld [vmem:[%s1334_s24 + $0x20] sm:$0xff]  ;;  %v301_v25 = vld [vmem:[%s1334_s24 + $0x38] sm:$0xff]  ;;  %v302_v30 = vld [vmem:[%s1334_s24 + $0x48] sm:$0xff] }
  0x13   : > { %v303_v31 = vld [vmem:[%s1334_s24 + $0x50] sm:$0xff]  ;;  %v1370_v37 = vld [vmem:[%s1334_s24 + $0x1] sm:$0xff]  ;;  %v1381_v45 = vld [vmem:[%s1334_s24 + $0x18] sm:$0xff] }
  0x14   : > { %v1373_v38 = vld [vmem:[%s1334_s24 + $0x9] sm:$0xff]  ;;  %v1395_v56 = vld [vmem:[%s1334_s24 + $0x19] sm:$0xff]  ;;  %v1412_v6 = vld [vmem:[%s1334_s24 + $0x21] sm:$0xff] }
  0x15   : > { %v1406_v0 = vld [vmem:[%s1334_s24 + $0x39] sm:$0xff]  ;;  %v1416_v7 = vld [vmem:[%s1334_s24 + $0x31] sm:$0xff] }
  0x17   : > { %349 = vperm.xlu2 %1190, %v1307_v8  }
  0x19   : > { %325 = vperm.xlu1 %1189, %v1309_v9   ;;  %1194 = vset.pattern.permute.xlu0 %v1242_v10 }
  0x1a   : > { %413 = vperm.xlu0 %1194, %v1307_v8  }
  0x1f   : > { %1193 = vset.pattern.permute.xlu2 %v1242_v10 }
  0x20   : > { %409 = vperm.xlu2 %1193, %v1299_v2  }
  0x21   : > { %1192 = vset.pattern.permute.xlu1 %v1240_v1 }
  0x22   : > { %357 = vperm.xlu1 %1192, %v1309_v9   ;;  %1196 = vset.pattern.permute.xlu0 %v1243_v11 }
  0x23   : > { %481 = vperm.xlu0 %1196, %v1299_v2  }
  0x28   : > { %421 = vperm.xlu2 %1193, %v1309_v9  }
  0x2a   : > { %1195 = vset.pattern.permute.xlu1 %v1242_v10 }
  0x2b   : > { %417 = vperm.xlu1 %1195, %v1303_v5   ;;  %1200 = vset.pattern.permute.xlu0 %v1244_v12 }
  0x2c   : > { %517 = vperm.xlu0 %1200, %v1307_v8  }
  0x30   : > { %1198 = vset.pattern.permute.xlu2 %v1243_v11 }
  0x31   : > { %489 = vperm.xlu2 %1198, %v1303_v5  }
  0x33   : > { %1197 = vset.pattern.permute.xlu1 %v1243_v11 }
  0x34   : > { %485 = vperm.xlu1 %1197, %v1307_v8   ;;  %1202 = vset.pattern.permute.xlu0 %v1247_v51 }
  0x39   : > { %1199 = vset.pattern.permute.xlu2 %v1244_v12 }
  0x3a   : > { %513 = vperm.xlu2 %1199, %v1299_v2  }
  0x3c   : > { %493 = vperm.xlu1 %1197, %v1309_v9  }
  0x42   : > { %525 = vperm.xlu2 %1199, %v1309_v9  }
  0x44   : > { %1201 = vset.pattern.permute.xlu1 %v1244_v12 }
  0x45   : > { %521 = vperm.xlu1 %1201, %v1303_v5  }
  0x4a   : > { %1204 = vset.pattern.permute.xlu2 %v1247_v51 }
  0x4d   : > { %1203 = vset.pattern.permute.xlu1 %v1247_v51 }
  0x69   : > { %v346_v15 = vpop.permute.xlu2 %345 }
  0x6a   : > { %v360_v16 = vmul.f32 %v346_v15, %v1337_v13  ;;  %v361_v17 = vmul.f32 %v346_v15, %v1340_v14  ;;  %v1423_v15 = vld [vmem:[%s1334_s24 + $0x49] sm:$0xff] }
  0x6c   : > { %378 = vrot.lane.b32.xlu1 %v361_v17, %s1245_s25  ;;  %376 = vrot.lane.b32.xlu2 %v360_v16, %s1245_s25  ;;  %v1427_v16 = vld [vmem:[%s1334_s24 + $0x51] sm:$0xff] }
  0x71   : > { %v350_v19 = vpop.permute.xlu2 %349 }
  0x72   : > { %v363_v20 = vmul.f32 %v350_v19, %v1347_v18  ;;  %v362_v49 = vmul.f32 %v350_v19, %v1381_v45 }
  0x74   : > { %382 = vrot.lane.b32.xlu0 %v363_v20, %s1245_s25 }
  0x7a   : > { %v410_v21 = vpop.permute.xlu2 %409 }
  0x7b   : > { %v424_v22 = vmul.f32 %v410_v21, %v1337_v13  ;;  %v425_v23 = vmul.f32 %v410_v21, %v1340_v14 }
  0x7d   : > { %440 = vrot.lane.b32.xlu1 %v424_v22, %s1246_s26  ;;  %442 = vrot.lane.b32.xlu2 %v425_v23, %s1246_s26 }
  0x82   : > { %v422_v26 = vpop.permute.xlu2 %421 }
  0x83   : > { %v322_v27 = vpop.permute.xlu1 %321  ;;  %v354_v36 = vpop.permute.xlu0 %353  ;;  %v430_v62 = vmul.f32 %v422_v26, %v302_v30  ;;  %v431_v63 = vmul.f32 %v422_v26, %v303_v31 }
  0x84   : > { %v1357_v28 = vmul.f32 %v322_v27, %v300_v24  ;;  %v1359_v29 = vmul.f32 %v322_v27, %v301_v25  ;;  %v364_v46 = vmul.f32 %v354_v36, %v300_v24  ;;  %v365_v54 = vmul.f32 %v354_v36, %v301_v25 }
  0x8b   : > { %v1363_v32 = vpop.permute.xlu2 %489  ;;  %v326_v33 = vpop.permute.xlu1 %325 }
  0x8c   : > { %v1365_v34 = vmul.f32 %v326_v33, %v302_v30  ;;  %v1367_v35 = vmul.f32 %v326_v33, %v303_v31  ;;  %v414_v44 = vpop.permute.xlu0 %413 }
  0x8d   : > { %v426_v47 = vmul.f32 %v414_v44, %v1381_v45  ;;  %v427_v60 = vmul.f32 %v414_v44, %v1347_v18  ;;  %v500_v44 = vmul.f32 %v1363_v32, %v1416_v7 }
  0x94   : > { %v358_v39 = vpop.permute.xlu1 %357  ;;  %v514_v40 = vpop.permute.xlu2 %513 }
  0x95   : > { %v366_v41 = vmul.f32 %v358_v39, %v302_v30  ;;  %v528_v42 = vmul.f32 %v514_v40, %v1370_v37  ;;  %v529_v43 = vmul.f32 %v514_v40, %v1373_v38  ;;  %v1385_v50 = vpop.permute.xlu0 %481  ;;  %v367_v53 = vmul.f32 %v358_v39, %v303_v31 }
  0x97   : > { %388 = vrot.lane.b32.xlu0 %v366_v41, %s1245_s25  ;;  %544 = vrot.lane.b32.xlu1 %v528_v42, %s1245_s25 }
  0x98   : > { %546 = vrot.lane.b32.xlu2 %v529_v43, %s1245_s25 }
  0x9c   : > { %v526_v12 = vpop.permute.xlu2 %525 }
  0x9d   : > { %v418_v48 = vpop.permute.xlu1 %417  ;;  %v534_v17 = vmul.f32 %v526_v12, %v1423_v15  ;;  %v535_v19 = vmul.f32 %v526_v12, %v1427_v16  ;;  %v1248_v12 = vmov 6  }
  0x9e   : > { %v429_v52 = vmul.f32 %v418_v48, %v301_v25  ;;  %v518_v57 = vpop.permute.xlu0 %517  ;;  %v428_v59 = vmul.f32 %v418_v48, %v300_v24 }
  0x9f   : > { %444 = vrot.lane.b32.xlu0 %v426_v47, %s1246_s26  ;;  %384 = vrot.lane.b32.xlu1 %v364_v46, %s1245_s25  ;;  %v530_v58 = vmul.f32 %v518_v57, %v1395_v56  ;;  %v531_v10 = vmul.f32 %v518_v57, %v1412_v6 }
  0xa0   : > { %380 = vrot.lane.b32.xlu2 %v362_v49, %s1245_s25 }
  0xa6   : > { %v1390_v55 = vpop.permute.xlu1 %485 }
  0xa7   : > { %450 = vrot.lane.b32.xlu0 %v429_v52, %s1246_s26  ;;  %390 = vrot.lane.b32.xlu1 %v367_v53, %s1245_s25 }
  0xa8   : > { %386 = vrot.lane.b32.xlu2 %v365_v54, %s1245_s25 }
  0xae   : > { %v1400_v61 = vpop.permute.xlu1 %493 }
  0xaf   : > { %446 = vrot.lane.b32.xlu1 %v427_v60, %s1246_s26  ;;  %548 = vrot.lane.b32.xlu0 %v530_v58, %s1245_s25 }
  0xb0   : > { %448 = vrot.lane.b32.xlu2 %v428_v59, %s1246_s26 }
  0xb7   : > { %v522_v1 = vpop.permute.xlu1 %521  ;;  %452 = vrot.lane.b32.xlu1 %v430_v62, %s1246_s26 }
  0xb8   : > { %v533_v4 = vmul.f32 %v522_v1, %v1406_v0  ;;  %454 = vrot.lane.b32.xlu2 %v431_v63, %s1246_s26  ;;  %v532_v11 = vmul.f32 %v522_v1, %v1416_v7 }
  0xba   : > { %554 = vrot.lane.b32.xlu0 %v533_v4, %s1245_s25 }
  0xbf   : > { %550 = vrot.lane.b32.xlu1 %v531_v10, %s1245_s25 }
  0xc0   : > { %552 = vrot.lane.b32.xlu2 %v532_v11, %s1245_s25 }
  0xc2   : > { %577 = vperm.xlu0 %1202, %v1299_v2  }
  0xc6   : > { %v1436_v20 = vpop.permute.xlu2 %376 }
  0xc7   : > { %556 = vrot.lane.b32.xlu1 %v534_v17, %s1245_s25 }
  0xc8   : > { %558 = vrot.lane.b32.xlu2 %v535_v19, %s1245_s25 }
  0xca   : > { %1207 = vset.pattern.permute.xlu0 %v1248_v12 }
  0xcf   : > { %581 = vperm.xlu1 %1203, %v1307_v8  }
  0xd0   : > { %585 = vperm.xlu2 %1204, %v1303_v5  }
  0xd7   : > { %589 = vperm.xlu1 %1203, %v1309_v9   ;;  %v1438_v21 = vpop.permute.xlu2 %442 }
  0xd8   : > { %1206 = vset.pattern.permute.xlu2 %v1248_v12 }
  0xde   : > { %v1442_v23 = vpop.permute.xlu1 %378 }
  0xdf   : > { %1205 = vset.pattern.permute.xlu1 %v1248_v12 }
  0xe6   : > { %v1446_v25 = vpop.permute.xlu0 %382 }
  0xef   : > { %v1448_v26 = vpop.permute.xlu1 %440 }
  0xf2   : > { %v1440_v22 = vpop.permute.xlu2 %546 }
  0xfa   : > { %v1444_v24 = vpop.permute.xlu2 %380 }
 0x102   : > { %v387_v27 = vpop.permute.xlu2 %386 }
 0x103   : > { %v405_v30 = vadd.f32 %v387_v27, %v1359_v29  ;;  %v501_v29 = vmul.f32 %v1363_v32, %v1406_v0 }
 0x109   : > { %v389_v31 = vpop.permute.xlu0 %388  ;;  %v1451_v33 = vpop.permute.xlu1 %544 }
 0x10a   : > { %v406_v36 = vadd.f32 %v389_v31, %v1365_v34  ;;  %v449_v39 = vpop.permute.xlu2 %448 }
 0x111   : > { %v1454_v40 = vpop.permute.xlu0 %444  ;;  %v385_v41 = vpop.permute.xlu1 %384 }
 0x112   : > { %v404_v42 = vadd.f32 %v385_v41, %v1357_v28  ;;  %v455_v43 = vpop.permute.xlu2 %454  ;;  %v503_v28 = vmul.f32 %v1400_v61, %v1427_v16 }
 0x114   : > { %v468_v46 = vadd.f32 %v449_v39, %v404_v42 }
 0x116   : > { %v508_v47 = vadd.f32 %v500_v44, %v468_v46 }
 0x119   : > { %v451_v48 = vpop.permute.xlu0 %450  ;;  %v391_v49 = vpop.permute.xlu1 %390 }
 0x11a   : > { %v469_v51 = vadd.f32 %v451_v48, %v405_v30  ;;  %v407_v34 = vadd.f32 %v391_v49, %v1367_v35  ;;  %v553_v52 = vpop.permute.xlu2 %552  ;;  %v502_v35 = vmul.f32 %v1400_v61, %v1423_v15 }
 0x11b   : > { %v1462_v53 = vadd.f32 %v553_v52, %v508_v47 }
 0x11c   : > { %v471_v54 = vadd.f32 %v455_v43, %v407_v34  ;;  %v509_v57 = vadd.f32 %v501_v29, %v469_v51  ;;  %v1519_v51 = vld [vmem:[%s1334_s24 + $0x22] sm:$0xff] }
 0x11e   : > { %v511_v58 = vadd.f32 %v503_v28, %v471_v54  ;;  %v1528_v28 = vld [vmem:[%s1334_s24 + $0x2] sm:$0xff]  ;;  %v1531_v54 = vld [vmem:[%s1334_s24 + $0xa] sm:$0xff] }
 0x121   : > { %v1466_v59 = vpop.permute.xlu1 %446  ;;  %v1468_v62 = vpop.permute.xlu0 %548 }
 0x122   : > { %v559_v60 = vpop.permute.xlu2 %558 }
 0x123   : > { %v1470_v63 = vadd.f32 %v559_v60, %v511_v58 }
 0x129   : > { %v453_v32 = vpop.permute.xlu1 %452 }
 0x12a   : > { %v470_v1 = vadd.f32 %v453_v32, %v406_v36  ;;  %v586_v61 = vpop.permute.xlu2 %585 }
 0x12b   : > { %v596_v39 = vmul.f32 %v586_v61, %v1416_v7  ;;  %v597_v44 = vmul.f32 %v586_v61, %v1406_v0  ;;  %v1249_v7 = vmov 7   ;;  %v1250_v0 = vmov 8  }
 0x12c   : > { %v555_v4 = vpop.permute.xlu0 %554  ;;  %v510_v10 = vadd.f32 %v502_v35, %v470_v1  ;;  %v1540_v35 = vld [vmem:[%s1334_s24 + $0x32] sm:$0xff] }
 0x12d   : > { %v1474_v11 = vadd.f32 %v555_v4, %v509_v57 }
 0x131   : > { %v1476_v17 = vpop.permute.xlu1 %550 }
 0x134   : > { %v578_v19 = vpop.permute.xlu0 %577 }
 0x135   : > { %v592_v27 = vmul.f32 %v578_v19, %v1370_v37  ;;  %v593_v30 = vmul.f32 %v578_v19, %v1373_v38 }
 0x137   : > { %610 = vrot.lane.b32.xlu0 %v593_v30, %s1246_s26  ;;  %608 = vrot.lane.b32.xlu2 %v592_v27, %s1246_s26  ;;  %v1547_v27 = vld [vmem:[%s1334_s24 + $0x3a] sm:$0xff] }
 0x139   : > { %v557_v31 = vpop.permute.xlu1 %556 }
 0x13a   : > { %v574_v36 = vadd.f32 %v557_v31, %v510_v10 }
 0x13f   : > { %616 = vrot.lane.b32.xlu0 %v596_v39, %s1246_s26 }
 0x141   : > { %v582_v41 = vpop.permute.xlu1 %581 }
 0x142   : > { %v594_v42 = vmul.f32 %v582_v41, %v1395_v56  ;;  %v595_v43 = vmul.f32 %v582_v41, %v1412_v6 }
 0x144   : > { %612 = vrot.lane.b32.xlu1 %v594_v42, %s1246_s26  ;;  %614 = vrot.lane.b32.xlu2 %v595_v43, %s1246_s26  ;;  %v1561_v43 = vld [vmem:[%s1334_s24 + $0x52] sm:$0xff] }
 0x149   : > { %v590_v46 = vpop.permute.xlu1 %589 }
 0x14a   : > { %v598_v47 = vmul.f32 %v590_v46, %v1423_v15  ;;  %v599_v48 = vmul.f32 %v590_v46, %v1427_v16 }
 0x14c   : > { %620 = vrot.lane.b32.xlu2 %v598_v47, %s1246_s26  ;;  %618 = vrot.lane.b32.xlu1 %v597_v44, %s1246_s26 }
 0x14d   : > { %622 = vrot.lane.b32.xlu0 %v599_v48, %s1246_s26 }
 0x154   : > { %653 = vperm.xlu2 %1206, %v1307_v8   ;;  %649 = vperm.xlu1 %1205, %v1299_v2  }
 0x155   : > { %657 = vperm.xlu0 %1207, %v1303_v5  }
 0x15c   : > { %1208 = vset.pattern.permute.xlu2 %v1249_v7  ;;  %661 = vperm.xlu1 %1205, %v1309_v9  }
 0x15d   : > { %1210 = vset.pattern.permute.xlu0 %v1249_v7  ;;  %681 = vperm.xlu2 %1208, %v1299_v2  }
 0x15e   : > { %693 = vperm.xlu0 %1210, %v1309_v9  }
 0x164   : > { %1209 = vset.pattern.permute.xlu1 %v1249_v7 }
 0x165   : > { %689 = vperm.xlu2 %1208, %v1303_v5   ;;  %685 = vperm.xlu1 %1209, %v1307_v8  }
 0x166   : > { %1211 = vset.pattern.permute.xlu0 %v1241_v3 }
 0x167   : > { %313 = vperm.xlu0 %1211, %v1299_v2  }
 0x16d   : > { %1212 = vset.pattern.permute.xlu1 %v1250_v0  ;;  %1213 = vset.pattern.permute.xlu2 %v1250_v0 }
 0x16e   : > { %745 = vperm.xlu1 %1212, %v1299_v2   ;;  %749 = vperm.xlu2 %1213, %v1307_v8  }
 0x16f   : > { %317 = vperm.xlu0 %1211, %v1307_v8   ;;  %v642_v8 = vld [vmem:[%s1334_s24 + $0x1a] sm:$0xff] }
 0x176   : > { %753 = vperm.xlu1 %1212, %v1303_v5   ;;  %757 = vperm.xlu2 %1213, %v1309_v9  }
 0x17e   : > { %1214 = vset.pattern.permute.xlu1 %v1241_v3  ;;  %1215 = vset.pattern.permute.xlu2 %v1241_v3 }
 0x191   : > { %v1511_v15 = vpop.permute.xlu2 %608 }
 0x19e   : > { %v1513_v16 = vpop.permute.xlu2 %614 }
 0x1a6   : > { %v621_v49 = vpop.permute.xlu2 %620 }
 0x1a7   : > { %v638_v2 = vadd.f32 %v621_v49, %v574_v36 }
 0x1a9   : > { %v1515_v29 = vpop.permute.xlu0 %610 }
 0x1ae   : > { %v654_v5 = vpop.permute.xlu2 %653 }
 0x1af   : > { %v1521_v34 = vmul.f32 %v654_v5, %v642_v8  ;;  %v1524_v9 = vmul.f32 %v654_v5, %v1519_v51 }
 0x1b1   : > { %v617_v52 = vpop.permute.xlu0 %616 }
 0x1b2   : > { %v636_v3 = vadd.f32 %v617_v52, %v1462_v53 }
 0x1b6   : > { %v1533_v57 = vpop.permute.xlu1 %612 }
 0x1b7   : > { %v682_v58 = vpop.permute.xlu2 %681 }
 0x1b8   : > { %v696_v60 = vmul.f32 %v682_v58, %v1528_v28  ;;  %v697_v32 = vmul.f32 %v682_v58, %v1531_v54 }
 0x1ba   : > { %714 = vrot.lane.b32.xlu1 %v697_v32, %s1245_s25  ;;  %712 = vrot.lane.b32.xlu0 %v696_v60, %s1245_s25 }
 0x1be   : > { %v619_v1 = vpop.permute.xlu1 %618 }
 0x1bf   : > { %v637_v53 = vadd.f32 %v619_v1, %v1474_v11  ;;  %v623_v4 = vpop.permute.xlu0 %622  ;;  %v690_v10 = vpop.permute.xlu2 %689 }
 0x1c0   : > { %v639_v12 = vadd.f32 %v623_v4, %v1470_v63  ;;  %v700_v19 = vmul.f32 %v690_v10, %v1540_v35  ;;  %v1558_v63 = vld [vmem:[%s1334_s24 + $0x4a] sm:$0xff] }
 0x1c2   : > { %720 = vrot.lane.b32.xlu1 %v700_v19, %s1245_s25  ;;  %v701_v19 = vmul.f32 %v690_v10, %v1547_v27  ;;  %v498_v10 = vmul.f32 %v1390_v55, %v1395_v56 }
 0x1c6   : > { %v650_v30 = vpop.permute.xlu1 %649 }
 0x1c7   : > { %v664_v61 = vmul.f32 %v650_v30, %v1528_v28  ;;  %v665_v31 = vmul.f32 %v650_v30, %v1531_v54  ;;  %v658_v36 = vpop.permute.xlu0 %657 }
 0x1c8   : > { %v668_v39 = vmul.f32 %v658_v36, %v1540_v35  ;;  %v669_v11 = vmul.f32 %v658_v36, %v1547_v27  ;;  %v750_v5 = vpop.permute.xlu2 %749 }
 0x1ca   : > { %v1553_v41 = vadd.f32 %v668_v39, %v636_v3  ;;  %v1555_v42 = vadd.f32 %v669_v11, %v637_v53  ;;  %v762_v3 = vmul.f32 %v750_v5, %v642_v8 }
 0x1ce   : > { %v662_v44 = vpop.permute.xlu1 %661 }
 0x1cf   : > { %v670_v46 = vmul.f32 %v662_v44, %v1558_v63  ;;  %v671_v47 = vmul.f32 %v662_v44, %v1561_v43 }
 0x1d0   : > { %v694_v48 = vpop.permute.xlu0 %693 }
 0x1d1   : > { %v703_v7 = vmul.f32 %v694_v48, %v1561_v43  ;;  %v1566_v0 = vadd.f32 %v671_v47, %v639_v12  ;;  %v1568_v49 = vadd.f32 %v670_v46, %v638_v2  ;;  %v497_v12 = vmul.f32 %v1385_v50, %v1373_v38 }
 0x1d2   : > { %v702_v30 = vmul.f32 %v694_v48, %v1558_v63 }
 0x1d3   : > { %726 = vrot.lane.b32.xlu1 %v703_v7, %s1245_s25  ;;  %v758_v7 = vpop.permute.xlu2 %757 }
 0x1d7   : > { %v686_v52 = vpop.permute.xlu1 %685 }
 0x1d8   : > { %v698_v58 = vmul.f32 %v686_v52, %v642_v8  ;;  %v699_v60 = vmul.f32 %v686_v52, %v1519_v51  ;;  %v496_v8 = vmul.f32 %v1385_v50, %v1370_v37 }
 0x1d9   : > { %v314_v32 = vpop.permute.xlu0 %313 }
 0x1da   : > { %v328_v1 = vmul.f32 %v314_v32, %v1337_v13  ;;  %v329_v53 = vmul.f32 %v314_v32, %v1340_v14  ;;  %716 = vrot.lane.b32.xlu2 %v698_v58, %s1245_s25  ;;  %718 = vrot.lane.b32.xlu0 %v699_v60, %s1245_s25 }
 0x1db   : > { %780 = vrot.lane.b32.xlu1 %v762_v3, %s1246_s26 }
 0x1dc   : > { %v400_v2 = vadd.f32 %v1436_v20, %v328_v1  ;;  %v401_v4 = vadd.f32 %v1442_v23, %v329_v53 }
 0x1de   : > { %v464_v13 = vadd.f32 %v1448_v26, %v400_v2  ;;  %v465_v14 = vadd.f32 %v1438_v21, %v401_v4 }
 0x1e0   : > { %v504_v36 = vadd.f32 %v496_v8, %v464_v13  ;;  %v505_v39 = vadd.f32 %v497_v12, %v465_v14  ;;  %v746_v11 = vpop.permute.xlu1 %745 }
 0x1e1   : > { %v318_v20 = vpop.permute.xlu0 %317 }
 0x1e2   : > { %v330_v23 = vmul.f32 %v318_v20, %v1381_v45  ;;  %v331_v44 = vmul.f32 %v318_v20, %v1347_v18  ;;  %724 = vrot.lane.b32.xlu0 %v702_v30, %s1245_s25  ;;  %722 = vrot.lane.b32.xlu2 %v701_v19, %s1245_s25  ;;  %v569_v37 = vadd.f32 %v1440_v22, %v505_v39 }
 0x1e3   : > { %v568_v38 = vadd.f32 %v1451_v33, %v504_v36  ;;  %v499_v18 = vmul.f32 %v1390_v55, %v1412_v6 }
 0x1e4   : > { %v402_v50 = vadd.f32 %v1444_v24, %v330_v23  ;;  %v403_v21 = vadd.f32 %v1446_v25, %v331_v44  ;;  %v633_v26 = vadd.f32 %v1515_v29, %v569_v37  ;;  %v760_v24 = vmul.f32 %v746_v11, %v1528_v28 }
 0x1e5   : > { %v632_v45 = vadd.f32 %v1511_v15, %v568_v38  ;;  %v761_v25 = vmul.f32 %v746_v11, %v1531_v54 }
 0x1e6   : > { %v466_v46 = vadd.f32 %v1454_v40, %v402_v50  ;;  %v467_v22 = vadd.f32 %v1466_v59, %v403_v21  ;;  %v1603_v47 = vadd.f32 %v665_v31, %v633_v26  ;;  %v808_v40 = vld [vmem:[%s1705_s2] sm:$0xf]  ;;  %v763_v31 = vmul.f32 %v750_v5, %v1519_v51 }
 0x1e7   : > { %v1605_v33 = vadd.f32 %v664_v61, %v632_v45  ;;  %v813_v61 = vperm.slane %v808_v40, 0  ;;  %v810_v51 = vrot.slane %v808_v40, 1 }
 0x1e8   : > { %v506_v29 = vadd.f32 %v498_v10, %v466_v46  ;;  %v507_v48 = vadd.f32 %v499_v18, %v467_v22  ;;  %v754_v56 = vpop.permute.xlu1 %753 }
 0x1e9   : > { %v765_v15 = vmul.f32 %v754_v56, %v1547_v27 }
 0x1ea   : > { %778 = vrot.lane.b32.xlu0 %v761_v25, %s1246_s26  ;;  %776 = vrot.lane.b32.xlu2 %v760_v24, %s1246_s26  ;;  %v570_v55 = vadd.f32 %v1468_v62, %v506_v29  ;;  %v571_v6 = vadd.f32 %v1476_v17, %v507_v48  ;;  %v764_v62 = vmul.f32 %v754_v56, %v1540_v35  ;;  %v812_v17 = vrot.slane %v808_v40, 3 }
 0x1eb   : > { %786 = vrot.lane.b32.xlu1 %v765_v15, %s1246_s26  ;;  %v814_v35 = vperm.slane %v810_v51, 0 }
 0x1ec   : > { %v634_v59 = vadd.f32 %v1533_v57, %v570_v55  ;;  %v635_v28 = vadd.f32 %v1513_v16, %v571_v6  ;;  %v816_v52 = vperm.slane %v812_v17, 0  ;;  %v766_v57 = vmul.f32 %v758_v7, %v1558_v63 }
 0x1ed   : > { %v767_v16 = vmul.f32 %v758_v7, %v1561_v43 }
 0x1ee   : > { %v674_v54 = vadd.f32 %v1521_v34, %v634_v59  ;;  %v675_v27 = vadd.f32 %v1524_v9, %v635_v28  ;;  %v811_v34 = vrot.slane %v808_v40, 2 }
 0x1f0   : > { %v815_v9 = vperm.slane %v811_v34, 0 }
 0x1f2   : > { %784 = vrot.lane.b32.xlu0 %v764_v62, %s1246_s26  ;;  %782 = vrot.lane.b32.xlu2 %v763_v31, %s1246_s26 }
 0x1f3   : > { %818 = vperm.xlu1 %1214, %v813_v61  }
 0x1fa   : > { %790 = vrot.lane.b32.xlu0 %v767_v16, %s1246_s26  ;;  %788 = vrot.lane.b32.xlu2 %v766_v57, %s1246_s26 }
 0x1fb   : > { %830 = vperm.xlu1 %1214, %v816_v52  }
 0x202   : > { %826 = vperm.xlu0 %1211, %v815_v9   ;;  %822 = vperm.xlu2 %1215, %v814_v35  }
 0x22c   : > { %v715_v3 = vpop.permute.xlu1 %714  ;;  %v713_v32 = vpop.permute.xlu0 %712 }
 0x22d   : > { %v737_v44 = vadd.f32 %v715_v3, %v1603_v47  ;;  %v736_v37 = vadd.f32 %v713_v32, %v1605_v33 }
 0x234   : > { %v717_v5 = vpop.permute.xlu2 %716  ;;  %v721_v60 = vpop.permute.xlu1 %720 }
 0x235   : > { %v738_v13 = vadd.f32 %v717_v5, %v674_v54  ;;  %v740_v59 = vadd.f32 %v721_v60, %v1553_v41 }
 0x23c   : > { %v723_v58 = vpop.permute.xlu2 %722 }
 0x23d   : > { %v741_v28 = vadd.f32 %v723_v58, %v1555_v42 }
 0x244   : > { %v777_v63 = vpop.permute.xlu2 %776 }
 0x245   : > { %v727_v1 = vpop.permute.xlu1 %726  ;;  %v800_v50 = vadd.f32 %v777_v63, %v736_v37 }
 0x246   : > { %v743_v33 = vadd.f32 %v727_v1, %v1566_v0 }
 0x24c   : > { %v719_v43 = vpop.permute.xlu0 %718  ;;  %v783_v53 = vpop.permute.xlu2 %782 }
 0x24d   : > { %v781_v8 = vpop.permute.xlu1 %780  ;;  %v739_v12 = vadd.f32 %v719_v43, %v675_v27 }
 0x24e   : > { %v802_v14 = vadd.f32 %v781_v8, %v738_v13 }
 0x24f   : > { %v803_v19 = vadd.f32 %v783_v53, %v739_v12  ;;  %v882_v12 = vlaneseq }
 0x254   : > { %v725_v2 = vpop.permute.xlu0 %724  ;;  %v789_v4 = vpop.permute.xlu2 %788 }
 0x255   : > { %v742_v22 = vadd.f32 %v725_v2, %v1568_v49 }
 0x257   : > { %v806_v25 = vadd.f32 %v789_v4, %v742_v22 }
 0x25c   : > { %v779_v30 = vpop.permute.xlu0 %778  ;;  %v823_v36 = vpop.permute.xlu2 %822 }
 0x25d   : > { %v835_v39 = vadd.f32 %v823_v36, %v802_v14  ;;  %v836_v11 = vadd.f32 %v823_v36, %v803_v19  ;;  %v787_v20 = vpop.permute.xlu1 %786  ;;  %v801_v21 = vadd.f32 %v779_v30, %v737_v44  ;;  %v883_v19 = vand.u32 127, %v882_v12 }
 0x25e   : > { %v805_v0 = vadd.f32 %v787_v20, %v741_v28 }
 0x25f   : > { %844 = vst.msk [vmem:[%s1634_s6 + $0x10] sm:$0xff] %vm841_vm0, %v835_v39  ;;  %v856_v23 = vsel %vm841_vm0, %v835_v39, 0.0  ;;  %v912_v38 = vmul.f32 %v836_v11, %v836_v11  ;;  %v859_v40 = vsel %vm841_vm0, %v836_v11, 0.0  ;;  %v911_v57 = vmul.f32 %v835_v39, %v835_v39 }
 0x260   : > { %845 = vst.msk [vmem:[%s1634_s6 + $0x18] sm:$0xff] %vm841_vm0, %v836_v11  ;;  %857 = vadd.xlane.f32.xlu0 %v856_v23  ;;  %v885_v30 = vadd.s32 4294967288, %v883_v19 }
 0x261   : > { %v926_v46 = vsel %vm841_vm0, %v912_v38, 0.0  ;;  %v923_v34 = vsel %vm841_vm0, %v911_v57, 0.0 }
 0x264   : > { %v785_v26 = vpop.permute.xlu0 %784 }
 0x265   : > { %v819_v10 = vpop.permute.xlu1 %818  ;;  %v804_v54 = vadd.f32 %v785_v26, %v740_v59 }
 0x266   : > { %v833_v45 = vadd.f32 %v819_v10, %v800_v50  ;;  %v834_v18 = vadd.f32 %v819_v10, %v801_v21 }
 0x268   : > { %842 = vst.msk [vmem:[%s1634_s6] sm:$0xff] %vm841_vm0, %v833_v45  ;;  %927 = vadd.xlane.f32.xlu0 %v926_v46  ;;  %v853_v24 = vsel %vm841_vm0, %v834_v18, 0.0  ;;  %v850_v47 = vsel %vm841_vm0, %v833_v45, 0.0  ;;  %v910_v48 = vmul.f32 %v834_v18, %v834_v18  ;;  %v909_v61 = vmul.f32 %v833_v45, %v833_v45 }
 0x269   : > { %843 = vst.msk [vmem:[%s1634_s6 + $0x8] sm:$0xff] %vm841_vm0, %v834_v18  ;;  %854 = vadd.xlane.f32.xlu1 %v853_v24  ;;  %851 = vadd.xlane.f32.xlu2 %v850_v47 }
 0x26a   : > { %v920_v6 = vsel %vm841_vm0, %v910_v48, 0.0  ;;  %v917_v41 = vsel %vm841_vm0, %v909_v61, 0.0 }
 0x26c   : > { %v791_v29 = vpop.permute.xlu0 %790 }
 0x26d   : > { %v807_v56 = vadd.f32 %v791_v29, %v743_v33  ;;  %v831_v49 = vpop.permute.xlu1 %830 }
 0x26e   : > { %v839_v15 = vadd.f32 %v831_v49, %v806_v25 }
 0x26f   : > { %v840_v55 = vadd.f32 %v831_v49, %v807_v56 }
 0x270   : > { %848 = vst.msk [vmem:[%s1634_s6 + $0x30] sm:$0xff] %vm841_vm0, %v839_v15  ;;  %v915_v9 = vmul.f32 %v839_v15, %v839_v15  ;;  %v868_v3 = vsel %vm841_vm0, %v839_v15, 0.0 }
 0x271   : > { %849 = vst.msk [vmem:[%s1634_s6 + $0x38] sm:$0xff] %vm841_vm0, %v840_v55  ;;  %921 = vadd.xlane.f32.xlu1 %v920_v6  ;;  %860 = vadd.xlane.f32.xlu2 %v859_v40  ;;  %v871_v51 = vsel %vm841_vm0, %v840_v55, 0.0  ;;  %v916_v58 = vmul.f32 %v840_v55, %v840_v55 }
 0x272   : > { %v935_v35 = vsel %vm841_vm0, %v915_v9, 0.0 }
 0x273   : > { %v938_v60 = vsel %vm841_vm0, %v916_v58, 0.0 }
 0x274   : > { %v827_v27 = vpop.permute.xlu0 %826 }
 0x275   : > { %v837_v31 = vadd.f32 %v827_v27, %v804_v54  ;;  %v838_v62 = vadd.f32 %v827_v27, %v805_v0 }
 0x277   : > { %846 = vst.msk [vmem:[%s1634_s6 + $0x20] sm:$0xff] %vm841_vm0, %v837_v31  ;;  %v862_v17 = vsel %vm841_vm0, %v837_v31, 0.0  ;;  %v913_v7 = vmul.f32 %v837_v31, %v837_v31  ;;  %v914_v52 = vmul.f32 %v838_v62, %v838_v62  ;;  %v865_v5 = vsel %vm841_vm0, %v838_v62, 0.0 }
 0x278   : > { %847 = vst.msk [vmem:[%s1634_s6 + $0x28] sm:$0xff] %vm841_vm0, %v838_v62 }
 0x279   : > { %863 = vadd.xlane.f32.xlu1 %v862_v17  ;;  %918 = vadd.xlane.f32.xlu2 %v917_v41  ;;  %v929_v42 = vsel %vm841_vm0, %v913_v7, 0.0  ;;  %v932_v16 = vsel %vm841_vm0, %v914_v52, 0.0 }
 0x27a   : > { %930 = vadd.xlane.f32.xlu0 %v929_v42 }
 0x281   : > { %933 = vadd.xlane.f32.xlu1 %v932_v16  ;;  %924 = vadd.xlane.f32.xlu2 %v923_v34 }
 0x282   : > { %872 = vadd.xlane.f32.xlu0 %v871_v51 }
 0x289   : > { %936 = vadd.xlane.f32.xlu1 %v935_v35  ;;  %866 = vadd.xlane.f32.xlu2 %v865_v5 }
 0x291   : > { %869 = vadd.xlane.f32.xlu2 %v868_v3 }
 0x299   : > { %939 = vadd.xlane.f32.xlu2 %v938_v60 }
 0x2d3   : > { %v858_v43 = vpop.xlane.xlu0 %857 }
 0x2d4   : > { %v889_v37 = vperm.slane %v858_v43, %v883_v19 }
 0x2db   : > { %v928_v4 = vpop.xlane.xlu0 %927 }
 0x2dc   : > { %v852_v32 = vpop.xlane.xlu2 %851  ;;  %v855_v63 = vpop.xlane.xlu1 %854  ;;  %v953_v47 = vperm.slane %v928_v4, %v885_v30 }
 0x2dd   : > { %v886_v11 = vperm.slane %v855_v63, %v885_v30  ;;  %v884_v20 = vperm.slane %v852_v32, %v883_v19 }
 0x2df   : > { %v888_v26 = vsel %vm887_vm1, %v886_v11, %v884_v20 }
 0x2e4   : > { %v861_v1 = vpop.xlane.xlu2 %860  ;;  %v922_v53 = vpop.xlane.xlu1 %921 }
 0x2e5   : > { %v890_v39 = vperm.slane %v861_v1, %v885_v30  ;;  %v950_v49 = vperm.slane %v922_v53, %v885_v30 }
 0x2e7   : > { %v891_v21 = vsel %vm887_vm1, %v890_v39, %v889_v37 }
 0x2e8   : > { %v899_v24 = vsel %vm898_vm2, %v891_v21, %v888_v26 }
 0x2ec   : > { %v919_v2 = vpop.xlane.xlu2 %918  ;;  %v864_v13 = vpop.xlane.xlu1 %863 }
 0x2ed   : > { %v931_v14 = vpop.xlane.xlu0 %930  ;;  %v892_v38 = vperm.slane %v864_v13, %v883_v19  ;;  %v949_v33 = vperm.slane %v919_v2, %v883_v19 }
 0x2ee   : > { %v955_v6 = vperm.slane %v931_v14, %v883_v19 }
 0x2ef   : > { %v951_v59 = vsel %vm887_vm1, %v950_v49, %v949_v33 }
 0x2f4   : > { %v925_v8 = vpop.xlane.xlu2 %924  ;;  %v934_v23 = vpop.xlane.xlu1 %933 }
 0x2f5   : > { %v873_v50 = vpop.xlane.xlu0 %872  ;;  %v952_v18 = vperm.slane %v925_v8, %v883_v19  ;;  %v956_v48 = vperm.slane %v934_v23, %v885_v30 }
 0x2f6   : > { %v896_v46 = vperm.slane %v873_v50, %v885_v30 }
 0x2f7   : > { %v954_v15 = vsel %vm887_vm1, %v953_v47, %v952_v18  ;;  %v957_v28 = vsel %vm887_vm1, %v956_v48, %v955_v6 }
 0x2f8   : > { %v961_v54 = vsel %vm898_vm2, %v954_v15, %v951_v59 }
 0x2f9   : > { %v962_v62 = vsel %vm900_vm4, %v957_v28, %v961_v54 }
 0x2fc   : > { %v867_v36 = vpop.xlane.xlu2 %866  ;;  %v937_v40 = vpop.xlane.xlu1 %936 }
 0x2fd   : > { %v893_v44 = vperm.slane %v867_v36, %v885_v30  ;;  %v958_v27 = vperm.slane %v937_v40, %v883_v19 }
 0x2ff   : > { %v894_v10 = vsel %vm887_vm1, %v893_v44, %v892_v38 }
 0x300   : > { %v901_v29 = vsel %vm900_vm4, %v894_v10, %v899_v24 }
 0x304   : > { %v870_v45 = vpop.xlane.xlu2 %869 }
 0x305   : > { %v895_v22 = vperm.slane %v870_v45, %v883_v19 }
 0x307   : > { %v897_v25 = vsel %vm887_vm1, %v896_v46, %v895_v22 }
 0x308   : > { %v903_v56 = vsel %vm902_vm3, %v897_v25, %v901_v29 }
 0x309   : > { %v906_v55 = vsel %vm905_vm5, %v903_v56, 0.0 }
 0x30a   : > { %907 = vadd.xlane.f32.xlu0 %v906_v55 }
 0x30c   : > { %v940_v0 = vpop.xlane.xlu2 %939 }
 0x30d   : > { %v959_v61 = vperm.slane %v940_v0, %v885_v30 }
 0x30f   : > { %v960_v31 = vsel %vm887_vm1, %v959_v61, %v958_v27 }
 0x310   : > { %v963_v17 = vsel %vm902_vm3, %v960_v31, %v962_v62 }
 0x311   : > { %v965_v7 = vsel %vm905_vm5, %v963_v17, 0.0 }
 0x312   : > { %966 = vadd.xlane.f32.xlu1 %v965_v7 }
 0x37d   : > { %v908_v41 = vpop.xlane.xlu0 %907 }
 0x385   : > { %v967_v42 = vpop.xlane.xlu1 %966 }
 0x386   : > { %v969_v52 = vsel %vm968_vm6, %v908_v41, %v967_v42 }
 0x387   : > { %971 = vst.msk [vmem:[%s294_s10] sm:$0xf] %vm970_vm7, %v969_v52 }
 0x388 PF: > { %s15_s17 = sadd.s32 1, %s1238_s17   ;;  %s1708_s15 = smov %s1234_s16 }
 0x389   : > { %p12_p5 = scmp.ge.s32.totalorder %s15_s17, 4   ;;  %s1709_s16 = smov %s1711_s18 }
 0x38b   :  { %14 = sbr.rel (!%p12_p5) target bundleno = 2 (0x2), region = 80 }

</bundles_post_ra>
